<compile_context>
chip_gen: v6e
topology: v6e:2x2x1
jax: 0.10.0
libtpu: 0.0.40
codegen_flags: <defaults>
</compile_context>

<pallas_src>
import functools

import jax
import jax.numpy as jnp
from jax import lax
from jax.experimental import pallas as pl
from jax.experimental.pallas import tpu as pltpu

LANE = 128
SUBLANE = 8


def _round_up(v, m):
    return (v + m - 1) // m * m


# ---------------------------------------------------------------------------
# Pallas kernel: full LSTM forward (input projection hoisted + recurrence)
# ---------------------------------------------------------------------------
def _lstm_kernel(x_ref, wih_ref, whh_ref, b_ref, out_ref, xg_scr,
                 *, seq_len, batch_pad, hidden_pad):
    """Fused single-layer LSTM.

    x_ref:   (T*Bp, Din)    time-major, batch padded to Bp (multiple of 8)
    wih_ref: (Din, 4*Hp)    gate-padded transposed W_ih
    whh_ref: (Hp,  4*Hp)    gate-padded transposed W_hh (rows padded to Hp)
    b_ref:   (1,   4*Hp)    gate-padded b_ih + b_hh
    out_ref: (T*Bp, Hp)     hidden state for every step (padded lanes are 0)
    xg_scr:  (T*Bp, 4*Hp)   VMEM scratch holding the hoisted input projection
    Gate order matches PyTorch: i, f, g, o (each at a 128-lane offset).
    """
    Hp = hidden_pad
    Bp = batch_pad

    # --- Hoisted input projection for all timesteps (one big MXU matmul). ---
    xg_scr[...] = (
        jnp.dot(x_ref[...], wih_ref[...], preferred_element_type=jnp.float32)
        + b_ref[...]
    )

    # --- Serial recurrence: only h @ W_hh + gate nonlinearities per step. ---
    def step(t, carry):
        h, c = carry
        row = pl.multiple_of(t * Bp, Bp)
        g = xg_scr[pl.ds(row, Bp), :] + jnp.dot(
            h, whh_ref[...], preferred_element_type=jnp.float32
        )                                                   # (Bp, 4*Hp)
        i = jax.nn.sigmoid(g[:, 0 * Hp:1 * Hp])             # (Bp, Hp) whole vregs
        f = jax.nn.sigmoid(g[:, 1 * Hp:2 * Hp])
        gg = jnp.tanh(g[:, 2 * Hp:3 * Hp])
        o = jax.nn.sigmoid(g[:, 3 * Hp:4 * Hp])
        c = f * c + i * gg
        h = o * jnp.tanh(c)
        out_ref[pl.ds(row, Bp), :] = h                      # lane-dense 128-wide store
        return (h, c)

    h0 = jnp.zeros((Bp, Hp), jnp.float32)
    c0 = jnp.zeros((Bp, Hp), jnp.float32)
    unroll = min(seq_len, 8)
    lax.fori_loop(0, seq_len, step, (h0, c0), unroll=unroll)


# ---------------------------------------------------------------------------
# Wrapper
# ---------------------------------------------------------------------------
def lstm_forward(x, packed):
    """x: (B, C, T) float32 -> (B, C, T) float32 (identical to the PyTorch module)."""
    B, C, T = x.shape
    H = C                                        # hidden_size == input_size == 3*s
    Hp = _round_up(max(H, LANE), LANE)
    Bp = _round_up(max(B, SUBLANE), SUBLANE)

    xt = jnp.transpose(x, (2, 0, 1)).astype(jnp.float32)     # (T, B, C) time-major
    if Bp != B:
        xt = jnp.pad(xt, ((0, 0), (0, Bp - B), (0, 0)))
    x_flat = xt.reshape(T * Bp, C)

    kernel = functools.partial(
        _lstm_kernel, seq_len=T, batch_pad=Bp, hidden_pad=Hp
    )
    vmem = pl.BlockSpec(memory_space=pltpu.MemorySpace.VMEM)
    out = pl.pallas_call(
        kernel,
        out_shape=jax.ShapeDtypeStruct((T * Bp, Hp), jnp.float32),
        in_specs=[vmem, vmem, vmem, vmem],
        out_specs=vmem,
        scratch_shapes=[pltpu.VMEM((T * Bp, 4 * Hp), jnp.float32)],
    )(x_flat, packed["w_ih"], packed["w_hh"], packed["b"])

    out = out.reshape(T, Bp, Hp)[:, :B, :H]                  # drop padding
    return jnp.transpose(out, (1, 2, 0))                     # (B, C, T)


# ---------------------------------------------------------------------------
# Parameters (PyTorch-shaped init, then packed into the padded gate layout)
# ---------------------------------------------------------------------------
def init_raw_params(key, H):
    """Torch-convention weights: w_ih (4H, Din), w_hh (4H, H), b_ih/b_hh (4H,)."""
    scale = 1.0 / (H ** 0.5)
    k1, k2, k3, k4 = jax.random.split(key, 4)
    return {
        "w_ih": jax.random.uniform(k1, (4 * H, H), jnp.float32, -scale, scale),
        "w_hh": jax.random.uniform(k2, (4 * H, H), jnp.float32, -scale, scale),
        "b_ih": jax.random.uniform(k3, (4 * H,), jnp.float32, -scale, scale),
        "b_hh": jax.random.uniform(k4, (4 * H,), jnp.float32, -scale, scale),
    }


def _pad_gates(w, H, Hp):
    """(..., 4*H) -> (..., 4*Hp): each gate block zero-padded to Hp lanes."""
    lead = w.shape[:-1]
    w = w.reshape(*lead, 4, H)
    w = jnp.pad(w, [(0, 0)] * len(lead) + [(0, 0), (0, Hp - H)])
    return w.reshape(*lead, 4 * Hp)


def pack_params(raw, H):
    Hp = _round_up(max(H, LANE), LANE)
    w_ih_t = raw["w_ih"].T                                   # (Din, 4H)
    w_hh_t = raw["w_hh"].T                                   # (H,   4H)
    b = (raw["b_ih"] + raw["b_hh"]).reshape(1, 4 * H)
    w_ih_p = _pad_gates(w_ih_t, H, Hp)                       # (Din, 4*Hp)
    w_hh_p = _pad_gates(w_hh_t, H, Hp)                       # (H,   4*Hp)
    w_hh_p = jnp.pad(w_hh_p, ((0, Hp - H), (0, 0)))          # (Hp,  4*Hp)
    b_p = _pad_gates(b, H, Hp)                               # (1,   4*Hp)
    return {"w_ih": w_ih_p, "w_hh": w_hh_p, "b": b_p}


# ---------------------------------------------------------------------------
# Pure-JAX reference (mirrors the PyTorch module) for a correctness check
# ---------------------------------------------------------------------------
def lstm_reference(x, raw):
    B, C, T = x.shape
    H = C
    w_ih, w_hh = raw["w_ih"], raw["w_hh"]
    bias = raw["b_ih"] + raw["b_hh"]
    xt = jnp.transpose(x, (1, 0, 2)).transpose(2, 1, 0)      # (T, B, C)

    def cell(carry, x_t):
        h, c = carry
        g = x_t @ w_ih.T + h @ w_hh.T + bias
        i = jax.nn.sigmoid(g[:, 0 * H:1 * H])
        f = jax.nn.sigmoid(g[:, 1 * H:2 * H])
        gg = jnp.tanh(g[:, 2 * H:3 * H])
        o = jax.nn.sigmoid(g[:, 3 * H:4 * H])
        c = f * c + i * gg
        h = o * jnp.tanh(c)
        return (h, c), h

    h0 = jnp.zeros((B, H), jnp.float32)
    (_, _), hs = lax.scan(cell, (h0, h0), xt)                # (T, B, H)
    return jnp.transpose(hs, (1, 2, 0))                      # (B, C, T)


# ---------------------------------------------------------------------------
if __name__ == "__main__":
    key = jax.random.PRNGKey(0)
    k_x, k_w = jax.random.split(key)

    s = 16                      # input_size = hidden_size = 3*s = 48
    C = 3 * s
    B, T = 2, 8

    x = jax.random.normal(k_x, (B, C, T), jnp.float32)
    raw = init_raw_params(k_w, C)
    packed = pack_params(raw, C)

    fwd = jax.jit(lstm_forward)
    y = fwd(x, packed)
    jax.block_until_ready(y)

    assert y.shape == (B, C, T), y.shape
    assert y.dtype == jnp.float32

    y_ref = lstm_reference(x, raw)
    max_err = float(jnp.max(jnp.abs(y - y_ref)))
    assert max_err < 5e-3, f"max abs error vs reference: {max_err}"

    print("KERNEL_OK")
</pallas_src>

<mosaic_0001>
module attributes {stable_mosaic.version = 11 : i64} {
  func.func @_lstm_kernel(%arg0: memref<64x48xf32, #tpu.memory_space<vmem>>, %arg1: memref<48x512xf32, #tpu.memory_space<vmem>>, %arg2: memref<128x512xf32, #tpu.memory_space<vmem>>, %arg3: memref<1x512xf32, #tpu.memory_space<vmem>>, %arg4: memref<64x128xf32, #tpu.memory_space<vmem>>, %arg5: memref<64x512xf32, #tpu.memory_space<vmem>>) attributes {dimension_semantics = [], scalar_prefetch = 0 : i64, scratch_operands = 1 : i64, tpu.core_type = #tpu.core_type<tc>} {
    %c0 = arith.constant 0 : index
    %c0_0 = arith.constant 0 : index
    %0 = vector.load %arg0[%c0, %c0_0] : memref<64x48xf32, #tpu.memory_space<vmem>>, vector<64x48xf32>
    %c0_1 = arith.constant 0 : index
    %c0_2 = arith.constant 0 : index
    %1 = vector.load %arg1[%c0_1, %c0_2] : memref<48x512xf32, #tpu.memory_space<vmem>>, vector<48x512xf32>
    %cst = arith.constant dense<0.000000e+00> : vector<64x512xf32>
    %2 = tpu.matmul %0, %1, %cst {dimension_numbers = #tpu.dot_dimension_numbers<[1], [0], [0], [1], [0, 0, 1, 1], [], []>} : vector<64x48xf32>, vector<48x512xf32>, vector<64x512xf32> -> vector<64x512xf32>
    %c0_3 = arith.constant 0 : index
    %c0_4 = arith.constant 0 : index
    %3 = vector.load %arg3[%c0_3, %c0_4] : memref<1x512xf32, #tpu.memory_space<vmem>>, vector<1x512xf32>
    %4 = vector.broadcast %3 : vector<1x512xf32> to vector<64x512xf32>
    %5 = arith.addf %2, %4 : vector<64x512xf32>
    %c0_5 = arith.constant 0 : index
    %c0_6 = arith.constant 0 : index
    %6 = vector.load %arg5[%c0_5, %c0_6] : memref<64x512xf32, #tpu.memory_space<vmem>>, vector<64x512xf32>
    tpu.vector_store %arg5[%c0_5, %c0_6], %5 {strides = array<i32>} : memref<64x512xf32, #tpu.memory_space<vmem>>, vector<64x512xf32>,
    %cst_7 = arith.constant 0.000000e+00 : f32
    %7 = vector.broadcast %cst_7 : f32 to vector<8x128xf32>
    %cst_8 = arith.constant 0.000000e+00 : f32
    %8 = vector.broadcast %cst_8 : f32 to vector<8x128xf32>
    %c0_i32 = arith.constant 0 : i32
    %c8_i32 = arith.constant 8 : i32
    %9 = arith.muli %c0_i32, %c8_i32 : i32
    %10 = tpu.assume_multiple %9, 8 : i32
    %11 = arith.index_cast %10 : i32 to index
    %c0_9 = arith.constant 0 : index
    %12 = vector.load %arg5[%11, %c0_9] : memref<64x512xf32, #tpu.memory_space<vmem>>, vector<8x512xf32>
    %c0_10 = arith.constant 0 : index
    %c0_11 = arith.constant 0 : index
    %13 = vector.load %arg2[%c0_10, %c0_11] : memref<128x512xf32, #tpu.memory_space<vmem>>, vector<128x512xf32>
    %cst_12 = arith.constant dense<0.000000e+00> : vector<8x512xf32>
    %14 = tpu.matmul %7, %13, %cst_12 {dimension_numbers = #tpu.dot_dimension_numbers<[1], [0], [0], [1], [0, 0, 1, 1], [], []>} : vector<8x128xf32>, vector<128x512xf32>, vector<8x512xf32> -> vector<8x512xf32>
    %15 = arith.addf %12, %14 : vector<8x512xf32>
    %16 = vector.extract_strided_slice %15 {offsets = [0, 0], sizes = [8, 128], strides = [1, 1]} : vector<8x512xf32> to vector<8x128xf32>
    %17 = arith.negf %16 : vector<8x128xf32>
    %18 = math.exp %17 : vector<8x128xf32>
    %cst_13 = arith.constant 1.000000e+00 : f32
    %19 = vector.broadcast %cst_13 : f32 to vector<8x128xf32>
    %20 = arith.addf %19, %18 : vector<8x128xf32>
    %21 = arith.divf %19, %20 : vector<8x128xf32>
    %22 = vector.extract_strided_slice %15 {offsets = [0, 128], sizes = [8, 128], strides = [1, 1]} : vector<8x512xf32> to vector<8x128xf32>
    %23 = arith.negf %22 : vector<8x128xf32>
    %24 = math.exp %23 : vector<8x128xf32>
    %cst_14 = arith.constant 1.000000e+00 : f32
    %25 = vector.broadcast %cst_14 : f32 to vector<8x128xf32>
    %26 = arith.addf %25, %24 : vector<8x128xf32>
    %27 = arith.divf %25, %26 : vector<8x128xf32>
    %28 = vector.extract_strided_slice %15 {offsets = [0, 256], sizes = [8, 128], strides = [1, 1]} : vector<8x512xf32> to vector<8x128xf32>
    %29 = math.tanh %28 : vector<8x128xf32>
    %30 = vector.extract_strided_slice %15 {offsets = [0, 384], sizes = [8, 128], strides = [1, 1]} : vector<8x512xf32> to vector<8x128xf32>
    %31 = arith.negf %30 : vector<8x128xf32>
    %32 = math.exp %31 : vector<8x128xf32>
    %cst_15 = arith.constant 1.000000e+00 : f32
    %33 = vector.broadcast %cst_15 : f32 to vector<8x128xf32>
    %34 = arith.addf %33, %32 : vector<8x128xf32>
    %35 = arith.divf %33, %34 : vector<8x128xf32>
    %36 = arith.mulf %27, %8 : vector<8x128xf32>
    %37 = arith.mulf %21, %29 : vector<8x128xf32>
    %38 = arith.addf %36, %37 : vector<8x128xf32>
    %39 = math.tanh %38 : vector<8x128xf32>
    %40 = arith.mulf %35, %39 : vector<8x128xf32>
    %41 = arith.index_cast %10 : i32 to index
    %c0_16 = arith.constant 0 : index
    %42 = vector.load %arg4[%41, %c0_16] : memref<64x128xf32, #tpu.memory_space<vmem>>, vector<8x128xf32>
    tpu.vector_store %arg4[%41, %c0_16], %40 {strides = array<i32>} : memref<64x128xf32, #tpu.memory_space<vmem>>, vector<8x128xf32>,
    %c1_i32 = arith.constant 1 : i32
    %c8_i32_17 = arith.constant 8 : i32
    %43 = arith.muli %c1_i32, %c8_i32_17 : i32
    %44 = tpu.assume_multiple %43, 8 : i32
    %45 = arith.index_cast %44 : i32 to index
    %c0_18 = arith.constant 0 : index
    %46 = vector.load %arg5[%45, %c0_18] : memref<64x512xf32, #tpu.memory_space<vmem>>, vector<8x512xf32>
    %c0_19 = arith.constant 0 : index
    %c0_20 = arith.constant 0 : index
    %47 = vector.load %arg2[%c0_19, %c0_20] : memref<128x512xf32, #tpu.memory_space<vmem>>, vector<128x512xf32>
    %cst_21 = arith.constant dense<0.000000e+00> : vector<8x512xf32>
    %48 = tpu.matmul %40, %47, %cst_21 {dimension_numbers = #tpu.dot_dimension_numbers<[1], [0], [0], [1], [0, 0, 1, 1], [], []>} : vector<8x128xf32>, vector<128x512xf32>, vector<8x512xf32> -> vector<8x512xf32>
    %49 = arith.addf %46, %48 : vector<8x512xf32>
    %50 = vector.extract_strided_slice %49 {offsets = [0, 0], sizes = [8, 128], strides = [1, 1]} : vector<8x512xf32> to vector<8x128xf32>
    %51 = arith.negf %50 : vector<8x128xf32>
    %52 = math.exp %51 : vector<8x128xf32>
    %cst_22 = arith.constant 1.000000e+00 : f32
    %53 = vector.broadcast %cst_22 : f32 to vector<8x128xf32>
    %54 = arith.addf %53, %52 : vector<8x128xf32>
    %55 = arith.divf %53, %54 : vector<8x128xf32>
    %56 = vector.extract_strided_slice %49 {offsets = [0, 128], sizes = [8, 128], strides = [1, 1]} : vector<8x512xf32> to vector<8x128xf32>
    %57 = arith.negf %56 : vector<8x128xf32>
    %58 = math.exp %57 : vector<8x128xf32>
    %cst_23 = arith.constant 1.000000e+00 : f32
    %59 = vector.broadcast %cst_23 : f32 to vector<8x128xf32>
    %60 = arith.addf %59, %58 : vector<8x128xf32>
    %61 = arith.divf %59, %60 : vector<8x128xf32>
    %62 = vector.extract_strided_slice %49 {offsets = [0, 256], sizes = [8, 128], strides = [1, 1]} : vector<8x512xf32> to vector<8x128xf32>
    %63 = math.tanh %62 : vector<8x128xf32>
    %64 = vector.extract_strided_slice %49 {offsets = [0, 384], sizes = [8, 128], strides = [1, 1]} : vector<8x512xf32> to vector<8x128xf32>
    %65 = arith.negf %64 : vector<8x128xf32>
    %66 = math.exp %65 : vector<8x128xf32>
    %cst_24 = arith.constant 1.000000e+00 : f32
    %67 = vector.broadcast %cst_24 : f32 to vector<8x128xf32>
    %68 = arith.addf %67, %66 : vector<8x128xf32>
    %69 = arith.divf %67, %68 : vector<8x128xf32>
    %70 = arith.mulf %61, %38 : vector<8x128xf32>
    %71 = arith.mulf %55, %63 : vector<8x128xf32>
    %72 = arith.addf %70, %71 : vector<8x128xf32>
    %73 = math.tanh %72 : vector<8x128xf32>
    %74 = arith.mulf %69, %73 : vector<8x128xf32>
    %75 = arith.index_cast %44 : i32 to index
    %c0_25 = arith.constant 0 : index
    %76 = vector.load %arg4[%75, %c0_25] : memref<64x128xf32, #tpu.memory_space<vmem>>, vector<8x128xf32>
    tpu.vector_store %arg4[%75, %c0_25], %74 {strides = array<i32>} : memref<64x128xf32, #tpu.memory_space<vmem>>, vector<8x128xf32>,
    %c2_i32 = arith.constant 2 : i32
    %c8_i32_26 = arith.constant 8 : i32
    %77 = arith.muli %c2_i32, %c8_i32_26 : i32
    %78 = tpu.assume_multiple %77, 8 : i32
    %79 = arith.index_cast %78 : i32 to index
    %c0_27 = arith.constant 0 : index
    %80 = vector.load %arg5[%79, %c0_27] : memref<64x512xf32, #tpu.memory_space<vmem>>, vector<8x512xf32>
    %c0_28 = arith.constant 0 : index
    %c0_29 = arith.constant 0 : index
    %81 = vector.load %arg2[%c0_28, %c0_29] : memref<128x512xf32, #tpu.memory_space<vmem>>, vector<128x512xf32>
    %cst_30 = arith.constant dense<0.000000e+00> : vector<8x512xf32>
    %82 = tpu.matmul %74, %81, %cst_30 {dimension_numbers = #tpu.dot_dimension_numbers<[1], [0], [0], [1], [0, 0, 1, 1], [], []>} : vector<8x128xf32>, vector<128x512xf32>, vector<8x512xf32> -> vector<8x512xf32>
    %83 = arith.addf %80, %82 : vector<8x512xf32>
    %84 = vector.extract_strided_slice %83 {offsets = [0, 0], sizes = [8, 128], strides = [1, 1]} : vector<8x512xf32> to vector<8x128xf32>
    %85 = arith.negf %84 : vector<8x128xf32>
    %86 = math.exp %85 : vector<8x128xf32>
    %cst_31 = arith.constant 1.000000e+00 : f32
    %87 = vector.broadcast %cst_31 : f32 to vector<8x128xf32>
    %88 = arith.addf %87, %86 : vector<8x128xf32>
    %89 = arith.divf %87, %88 : vector<8x128xf32>
    %90 = vector.extract_strided_slice %83 {offsets = [0, 128], sizes = [8, 128], strides = [1, 1]} : vector<8x512xf32> to vector<8x128xf32>
    %91 = arith.negf %90 : vector<8x128xf32>
    %92 = math.exp %91 : vector<8x128xf32>
    %cst_32 = arith.constant 1.000000e+00 : f32
    %93 = vector.broadcast %cst_32 : f32 to vector<8x128xf32>
    %94 = arith.addf %93, %92 : vector<8x128xf32>
    %95 = arith.divf %93, %94 : vector<8x128xf32>
    %96 = vector.extract_strided_slice %83 {offsets = [0, 256], sizes = [8, 128], strides = [1, 1]} : vector<8x512xf32> to vector<8x128xf32>
    %97 = math.tanh %96 : vector<8x128xf32>
    %98 = vector.extract_strided_slice %83 {offsets = [0, 384], sizes = [8, 128], strides = [1, 1]} : vector<8x512xf32> to vector<8x128xf32>
    %99 = arith.negf %98 : vector<8x128xf32>
    %100 = math.exp %99 : vector<8x128xf32>
    %cst_33 = arith.constant 1.000000e+00 : f32
    %101 = vector.broadcast %cst_33 : f32 to vector<8x128xf32>
    %102 = arith.addf %101, %100 : vector<8x128xf32>
    %103 = arith.divf %101, %102 : vector<8x128xf32>
    %104 = arith.mulf %95, %72 : vector<8x128xf32>
    %105 = arith.mulf %89, %97 : vector<8x128xf32>
    %106 = arith.addf %104, %105 : vector<8x128xf32>
    %107 = math.tanh %106 : vector<8x128xf32>
    %108 = arith.mulf %103, %107 : vector<8x128xf32>
    %109 = arith.index_cast %78 : i32 to index
    %c0_34 = arith.constant 0 : index
    %110 = vector.load %arg4[%109, %c0_34] : memref<64x128xf32, #tpu.memory_space<vmem>>, vector<8x128xf32>
    tpu.vector_store %arg4[%109, %c0_34], %108 {strides = array<i32>} : memref<64x128xf32, #tpu.memory_space<vmem>>, vector<8x128xf32>,
    %c3_i32 = arith.constant 3 : i32
    %c8_i32_35 = arith.constant 8 : i32
    %111 = arith.muli %c3_i32, %c8_i32_35 : i32
    %112 = tpu.assume_multiple %111, 8 : i32
    %113 = arith.index_cast %112 : i32 to index
    %c0_36 = arith.constant 0 : index
    %114 = vector.load %arg5[%113, %c0_36] : memref<64x512xf32, #tpu.memory_space<vmem>>, vector<8x512xf32>
    %c0_37 = arith.constant 0 : index
    %c0_38 = arith.constant 0 : index
    %115 = vector.load %arg2[%c0_37, %c0_38] : memref<128x512xf32, #tpu.memory_space<vmem>>, vector<128x512xf32>
    %cst_39 = arith.constant dense<0.000000e+00> : vector<8x512xf32>
    %116 = tpu.matmul %108, %115, %cst_39 {dimension_numbers = #tpu.dot_dimension_numbers<[1], [0], [0], [1], [0, 0, 1, 1], [], []>} : vector<8x128xf32>, vector<128x512xf32>, vector<8x512xf32> -> vector<8x512xf32>
    %117 = arith.addf %114, %116 : vector<8x512xf32>
    %118 = vector.extract_strided_slice %117 {offsets = [0, 0], sizes = [8, 128], strides = [1, 1]} : vector<8x512xf32> to vector<8x128xf32>
    %119 = arith.negf %118 : vector<8x128xf32>
    %120 = math.exp %119 : vector<8x128xf32>
    %cst_40 = arith.constant 1.000000e+00 : f32
    %121 = vector.broadcast %cst_40 : f32 to vector<8x128xf32>
    %122 = arith.addf %121, %120 : vector<8x128xf32>
    %123 = arith.divf %121, %122 : vector<8x128xf32>
    %124 = vector.extract_strided_slice %117 {offsets = [0, 128], sizes = [8, 128], strides = [1, 1]} : vector<8x512xf32> to vector<8x128xf32>
    %125 = arith.negf %124 : vector<8x128xf32>
    %126 = math.exp %125 : vector<8x128xf32>
    %cst_41 = arith.constant 1.000000e+00 : f32
    %127 = vector.broadcast %cst_41 : f32 to vector<8x128xf32>
    %128 = arith.addf %127, %126 : vector<8x128xf32>
    %129 = arith.divf %127, %128 : vector<8x128xf32>
    %130 = vector.extract_strided_slice %117 {offsets = [0, 256], sizes = [8, 128], strides = [1, 1]} : vector<8x512xf32> to vector<8x128xf32>
    %131 = math.tanh %130 : vector<8x128xf32>
    %132 = vector.extract_strided_slice %117 {offsets = [0, 384], sizes = [8, 128], strides = [1, 1]} : vector<8x512xf32> to vector<8x128xf32>
    %133 = arith.negf %132 : vector<8x128xf32>
    %134 = math.exp %133 : vector<8x128xf32>
    %cst_42 = arith.constant 1.000000e+00 : f32
    %135 = vector.broadcast %cst_42 : f32 to vector<8x128xf32>
    %136 = arith.addf %135, %134 : vector<8x128xf32>
    %137 = arith.divf %135, %136 : vector<8x128xf32>
    %138 = arith.mulf %129, %106 : vector<8x128xf32>
    %139 = arith.mulf %123, %131 : vector<8x128xf32>
    %140 = arith.addf %138, %139 : vector<8x128xf32>
    %141 = math.tanh %140 : vector<8x128xf32>
    %142 = arith.mulf %137, %141 : vector<8x128xf32>
    %143 = arith.index_cast %112 : i32 to index
    %c0_43 = arith.constant 0 : index
    %144 = vector.load %arg4[%143, %c0_43] : memref<64x128xf32, #tpu.memory_space<vmem>>, vector<8x128xf32>
    tpu.vector_store %arg4[%143, %c0_43], %142 {strides = array<i32>} : memref<64x128xf32, #tpu.memory_space<vmem>>, vector<8x128xf32>,
    %c4_i32 = arith.constant 4 : i32
    %c8_i32_44 = arith.constant 8 : i32
    %145 = arith.muli %c4_i32, %c8_i32_44 : i32
    %146 = tpu.assume_multiple %145, 8 : i32
    %147 = arith.index_cast %146 : i32 to index
    %c0_45 = arith.constant 0 : index
    %148 = vector.load %arg5[%147, %c0_45] : memref<64x512xf32, #tpu.memory_space<vmem>>, vector<8x512xf32>
    %c0_46 = arith.constant 0 : index
    %c0_47 = arith.constant 0 : index
    %149 = vector.load %arg2[%c0_46, %c0_47] : memref<128x512xf32, #tpu.memory_space<vmem>>, vector<128x512xf32>
    %cst_48 = arith.constant dense<0.000000e+00> : vector<8x512xf32>
    %150 = tpu.matmul %142, %149, %cst_48 {dimension_numbers = #tpu.dot_dimension_numbers<[1], [0], [0], [1], [0, 0, 1, 1], [], []>} : vector<8x128xf32>, vector<128x512xf32>, vector<8x512xf32> -> vector<8x512xf32>
    %151 = arith.addf %148, %150 : vector<8x512xf32>
    %152 = vector.extract_strided_slice %151 {offsets = [0, 0], sizes = [8, 128], strides = [1, 1]} : vector<8x512xf32> to vector<8x128xf32>
    %153 = arith.negf %152 : vector<8x128xf32>
    %154 = math.exp %153 : vector<8x128xf32>
    %cst_49 = arith.constant 1.000000e+00 : f32
    %155 = vector.broadcast %cst_49 : f32 to vector<8x128xf32>
    %156 = arith.addf %155, %154 : vector<8x128xf32>
    %157 = arith.divf %155, %156 : vector<8x128xf32>
    %158 = vector.extract_strided_slice %151 {offsets = [0, 128], sizes = [8, 128], strides = [1, 1]} : vector<8x512xf32> to vector<8x128xf32>
    %159 = arith.negf %158 : vector<8x128xf32>
    %160 = math.exp %159 : vector<8x128xf32>
    %cst_50 = arith.constant 1.000000e+00 : f32
    %161 = vector.broadcast %cst_50 : f32 to vector<8x128xf32>
    %162 = arith.addf %161, %160 : vector<8x128xf32>
    %163 = arith.divf %161, %162 : vector<8x128xf32>
    %164 = vector.extract_strided_slice %151 {offsets = [0, 256], sizes = [8, 128], strides = [1, 1]} : vector<8x512xf32> to vector<8x128xf32>
    %165 = math.tanh %164 : vector<8x128xf32>
    %166 = vector.extract_strided_slice %151 {offsets = [0, 384], sizes = [8, 128], strides = [1, 1]} : vector<8x512xf32> to vector<8x128xf32>
    %167 = arith.negf %166 : vector<8x128xf32>
    %168 = math.exp %167 : vector<8x128xf32>
    %cst_51 = arith.constant 1.000000e+00 : f32
    %169 = vector.broadcast %cst_51 : f32 to vector<8x128xf32>
    %170 = arith.addf %169, %168 : vector<8x128xf32>
    %171 = arith.divf %169, %170 : vector<8x128xf32>
    %172 = arith.mulf %163, %140 : vector<8x128xf32>
    %173 = arith.mulf %157, %165 : vector<8x128xf32>
    %174 = arith.addf %172, %173 : vector<8x128xf32>
    %175 = math.tanh %174 : vector<8x128xf32>
    %176 = arith.mulf %171, %175 : vector<8x128xf32>
    %177 = arith.index_cast %146 : i32 to index
    %c0_52 = arith.constant 0 : index
    %178 = vector.load %arg4[%177, %c0_52] : memref<64x128xf32, #tpu.memory_space<vmem>>, vector<8x128xf32>
    tpu.vector_store %arg4[%177, %c0_52], %176 {strides = array<i32>} : memref<64x128xf32, #tpu.memory_space<vmem>>, vector<8x128xf32>,
    %c5_i32 = arith.constant 5 : i32
    %c8_i32_53 = arith.constant 8 : i32
    %179 = arith.muli %c5_i32, %c8_i32_53 : i32
    %180 = tpu.assume_multiple %179, 8 : i32
    %181 = arith.index_cast %180 : i32 to index
    %c0_54 = arith.constant 0 : index
    %182 = vector.load %arg5[%181, %c0_54] : memref<64x512xf32, #tpu.memory_space<vmem>>, vector<8x512xf32>
    %c0_55 = arith.constant 0 : index
    %c0_56 = arith.constant 0 : index
    %183 = vector.load %arg2[%c0_55, %c0_56] : memref<128x512xf32, #tpu.memory_space<vmem>>, vector<128x512xf32>
    %cst_57 = arith.constant dense<0.000000e+00> : vector<8x512xf32>
    %184 = tpu.matmul %176, %183, %cst_57 {dimension_numbers = #tpu.dot_dimension_numbers<[1], [0], [0], [1], [0, 0, 1, 1], [], []>} : vector<8x128xf32>, vector<128x512xf32>, vector<8x512xf32> -> vector<8x512xf32>
    %185 = arith.addf %182, %184 : vector<8x512xf32>
    %186 = vector.extract_strided_slice %185 {offsets = [0, 0], sizes = [8, 128], strides = [1, 1]} : vector<8x512xf32> to vector<8x128xf32>
    %187 = arith.negf %186 : vector<8x128xf32>
    %188 = math.exp %187 : vector<8x128xf32>
    %cst_58 = arith.constant 1.000000e+00 : f32
    %189 = vector.broadcast %cst_58 : f32 to vector<8x128xf32>
    %190 = arith.addf %189, %188 : vector<8x128xf32>
    %191 = arith.divf %189, %190 : vector<8x128xf32>
    %192 = vector.extract_strided_slice %185 {offsets = [0, 128], sizes = [8, 128], strides = [1, 1]} : vector<8x512xf32> to vector<8x128xf32>
    %193 = arith.negf %192 : vector<8x128xf32>
    %194 = math.exp %193 : vector<8x128xf32>
    %cst_59 = arith.constant 1.000000e+00 : f32
    %195 = vector.broadcast %cst_59 : f32 to vector<8x128xf32>
    %196 = arith.addf %195, %194 : vector<8x128xf32>
    %197 = arith.divf %195, %196 : vector<8x128xf32>
    %198 = vector.extract_strided_slice %185 {offsets = [0, 256], sizes = [8, 128], strides = [1, 1]} : vector<8x512xf32> to vector<8x128xf32>
    %199 = math.tanh %198 : vector<8x128xf32>
    %200 = vector.extract_strided_slice %185 {offsets = [0, 384], sizes = [8, 128], strides = [1, 1]} : vector<8x512xf32> to vector<8x128xf32>
    %201 = arith.negf %200 : vector<8x128xf32>
    %202 = math.exp %201 : vector<8x128xf32>
    %cst_60 = arith.constant 1.000000e+00 : f32
    %203 = vector.broadcast %cst_60 : f32 to vector<8x128xf32>
    %204 = arith.addf %203, %202 : vector<8x128xf32>
    %205 = arith.divf %203, %204 : vector<8x128xf32>
    %206 = arith.mulf %197, %174 : vector<8x128xf32>
    %207 = arith.mulf %191, %199 : vector<8x128xf32>
    %208 = arith.addf %206, %207 : vector<8x128xf32>
    %209 = math.tanh %208 : vector<8x128xf32>
    %210 = arith.mulf %205, %209 : vector<8x128xf32>
    %211 = arith.index_cast %180 : i32 to index
    %c0_61 = arith.constant 0 : index
    %212 = vector.load %arg4[%211, %c0_61] : memref<64x128xf32, #tpu.memory_space<vmem>>, vector<8x128xf32>
    tpu.vector_store %arg4[%211, %c0_61], %210 {strides = array<i32>} : memref<64x128xf32, #tpu.memory_space<vmem>>, vector<8x128xf32>,
    %c6_i32 = arith.constant 6 : i32
    %c8_i32_62 = arith.constant 8 : i32
    %213 = arith.muli %c6_i32, %c8_i32_62 : i32
    %214 = tpu.assume_multiple %213, 8 : i32
    %215 = arith.index_cast %214 : i32 to index
    %c0_63 = arith.constant 0 : index
    %216 = vector.load %arg5[%215, %c0_63] : memref<64x512xf32, #tpu.memory_space<vmem>>, vector<8x512xf32>
    %c0_64 = arith.constant 0 : index
    %c0_65 = arith.constant 0 : index
    %217 = vector.load %arg2[%c0_64, %c0_65] : memref<128x512xf32, #tpu.memory_space<vmem>>, vector<128x512xf32>
    %cst_66 = arith.constant dense<0.000000e+00> : vector<8x512xf32>
    %218 = tpu.matmul %210, %217, %cst_66 {dimension_numbers = #tpu.dot_dimension_numbers<[1], [0], [0], [1], [0, 0, 1, 1], [], []>} : vector<8x128xf32>, vector<128x512xf32>, vector<8x512xf32> -> vector<8x512xf32>
    %219 = arith.addf %216, %218 : vector<8x512xf32>
    %220 = vector.extract_strided_slice %219 {offsets = [0, 0], sizes = [8, 128], strides = [1, 1]} : vector<8x512xf32> to vector<8x128xf32>
    %221 = arith.negf %220 : vector<8x128xf32>
    %222 = math.exp %221 : vector<8x128xf32>
    %cst_67 = arith.constant 1.000000e+00 : f32
    %223 = vector.broadcast %cst_67 : f32 to vector<8x128xf32>
    %224 = arith.addf %223, %222 : vector<8x128xf32>
    %225 = arith.divf %223, %224 : vector<8x128xf32>
    %226 = vector.extract_strided_slice %219 {offsets = [0, 128], sizes = [8, 128], strides = [1, 1]} : vector<8x512xf32> to vector<8x128xf32>
    %227 = arith.negf %226 : vector<8x128xf32>
    %228 = math.exp %227 : vector<8x128xf32>
    %cst_68 = arith.constant 1.000000e+00 : f32
    %229 = vector.broadcast %cst_68 : f32 to vector<8x128xf32>
    %230 = arith.addf %229, %228 : vector<8x128xf32>
    %231 = arith.divf %229, %230 : vector<8x128xf32>
    %232 = vector.extract_strided_slice %219 {offsets = [0, 256], sizes = [8, 128], strides = [1, 1]} : vector<8x512xf32> to vector<8x128xf32>
    %233 = math.tanh %232 : vector<8x128xf32>
    %234 = vector.extract_strided_slice %219 {offsets = [0, 384], sizes = [8, 128], strides = [1, 1]} : vector<8x512xf32> to vector<8x128xf32>
    %235 = arith.negf %234 : vector<8x128xf32>
    %236 = math.exp %235 : vector<8x128xf32>
    %cst_69 = arith.constant 1.000000e+00 : f32
    %237 = vector.broadcast %cst_69 : f32 to vector<8x128xf32>
    %238 = arith.addf %237, %236 : vector<8x128xf32>
    %239 = arith.divf %237, %238 : vector<8x128xf32>
    %240 = arith.mulf %231, %208 : vector<8x128xf32>
    %241 = arith.mulf %225, %233 : vector<8x128xf32>
    %242 = arith.addf %240, %241 : vector<8x128xf32>
    %243 = math.tanh %242 : vector<8x128xf32>
    %244 = arith.mulf %239, %243 : vector<8x128xf32>
    %245 = arith.index_cast %214 : i32 to index
    %c0_70 = arith.constant 0 : index
    %246 = vector.load %arg4[%245, %c0_70] : memref<64x128xf32, #tpu.memory_space<vmem>>, vector<8x128xf32>
    tpu.vector_store %arg4[%245, %c0_70], %244 {strides = array<i32>} : memref<64x128xf32, #tpu.memory_space<vmem>>, vector<8x128xf32>,
    %c7_i32 = arith.constant 7 : i32
    %c8_i32_71 = arith.constant 8 : i32
    %247 = arith.muli %c7_i32, %c8_i32_71 : i32
    %248 = tpu.assume_multiple %247, 8 : i32
    %249 = arith.index_cast %248 : i32 to index
    %c0_72 = arith.constant 0 : index
    %250 = vector.load %arg5[%249, %c0_72] : memref<64x512xf32, #tpu.memory_space<vmem>>, vector<8x512xf32>
    %c0_73 = arith.constant 0 : index
    %c0_74 = arith.constant 0 : index
    %251 = vector.load %arg2[%c0_73, %c0_74] : memref<128x512xf32, #tpu.memory_space<vmem>>, vector<128x512xf32>
    %cst_75 = arith.constant dense<0.000000e+00> : vector<8x512xf32>
    %252 = tpu.matmul %244, %251, %cst_75 {dimension_numbers = #tpu.dot_dimension_numbers<[1], [0], [0], [1], [0, 0, 1, 1], [], []>} : vector<8x128xf32>, vector<128x512xf32>, vector<8x512xf32> -> vector<8x512xf32>
    %253 = arith.addf %250, %252 : vector<8x512xf32>
    %254 = vector.extract_strided_slice %253 {offsets = [0, 0], sizes = [8, 128], strides = [1, 1]} : vector<8x512xf32> to vector<8x128xf32>
    %255 = arith.negf %254 : vector<8x128xf32>
    %256 = math.exp %255 : vector<8x128xf32>
    %cst_76 = arith.constant 1.000000e+00 : f32
    %257 = vector.broadcast %cst_76 : f32 to vector<8x128xf32>
    %258 = arith.addf %257, %256 : vector<8x128xf32>
    %259 = arith.divf %257, %258 : vector<8x128xf32>
    %260 = vector.extract_strided_slice %253 {offsets = [0, 128], sizes = [8, 128], strides = [1, 1]} : vector<8x512xf32> to vector<8x128xf32>
    %261 = arith.negf %260 : vector<8x128xf32>
    %262 = math.exp %261 : vector<8x128xf32>
    %cst_77 = arith.constant 1.000000e+00 : f32
    %263 = vector.broadcast %cst_77 : f32 to vector<8x128xf32>
    %264 = arith.addf %263, %262 : vector<8x128xf32>
    %265 = arith.divf %263, %264 : vector<8x128xf32>
    %266 = vector.extract_strided_slice %253 {offsets = [0, 256], sizes = [8, 128], strides = [1, 1]} : vector<8x512xf32> to vector<8x128xf32>
    %267 = math.tanh %266 : vector<8x128xf32>
    %268 = vector.extract_strided_slice %253 {offsets = [0, 384], sizes = [8, 128], strides = [1, 1]} : vector<8x512xf32> to vector<8x128xf32>
    %269 = arith.negf %268 : vector<8x128xf32>
    %270 = math.exp %269 : vector<8x128xf32>
    %cst_78 = arith.constant 1.000000e+00 : f32
    %271 = vector.broadcast %cst_78 : f32 to vector<8x128xf32>
    %272 = arith.addf %271, %270 : vector<8x128xf32>
    %273 = arith.divf %271, %272 : vector<8x128xf32>
    %274 = arith.mulf %265, %242 : vector<8x128xf32>
    %275 = arith.mulf %259, %267 : vector<8x128xf32>
    %276 = arith.addf %274, %275 : vector<8x128xf32>
    %277 = math.tanh %276 : vector<8x128xf32>
    %278 = arith.mulf %273, %277 : vector<8x128xf32>
    %279 = arith.index_cast %248 : i32 to index
    %c0_79 = arith.constant 0 : index
    %280 = vector.load %arg4[%279, %c0_79] : memref<64x128xf32, #tpu.memory_space<vmem>>, vector<8x128xf32>
    tpu.vector_store %arg4[%279, %c0_79], %278 {strides = array<i32>} : memref<64x128xf32, #tpu.memory_space<vmem>>, vector<8x128xf32>,
    %c8_i32_80 = arith.constant 8 : i32
    return
  }
}

</mosaic_0001>

<bundles_post_ra>
// kernel: lstm_forward.1
= control target key start
LH: loop header
LB: loop body
LE: loop exit
PB: predicated region body
PF: predicated region fallthrough
CT: control target
= control target key end

     0   :  { %9 = vsyncpa [#allocation4], 0  ;;  %s3543_s0 = inlined_call_operand.vmem [shape: f32[64,48], index: 0, kind: input, shape index: {}]   ;;  %s3544_s1 = inlined_call_operand.hbm [shape: f32[48,512], index: 1, kind: input, shape index: {}]   ;;  %s3545_s2 = inlined_call_operand.hbm [shape: f32[128,512], index: 2, kind: input, shape index: {}]   ;;  %s3546_s3 = inlined_call_operand.vmem [shape: f32[1,512], index: 3, kind: input, shape index: {}]   ;;  %s3547_s4 = inlined_call_operand.vmem [shape: f32[64,128], index: 4, kind: output, shape index: {}]  }
   0x1   :  { %10 = vsyncpa [#allocation6], 0  ;;  %s2562_s15 = smov [#allocation3]  }
   0x2   :  { %s18_s16 = sshll.u32 %s2562_s15, 4  ;;  %s19_s16 = int_to_ptr.vmem [resolvable:$true] %s18_s16 }
   0x3   :  { %s2526_s17 = scalar_lea.vmem %s19_s16, 3072  ;;  %p2531_p1 = scmp.lt.s32.totalorder %s19_s16, %s19_s16 }
   0x4   :  { %p2527_p0 = scmp.ne.s32.totalorder %s19_s16, %s2526_s17  ;;  %p2532_p2 = scmp.lt.s32.totalorder %s2526_s17, %s2526_s17 }
   0x6   :  { %p2533_p3 = por %p2532_p2, %p2531_p1 }
   0x8   :  { %p2534_p4 = pnand %p2533_p3, %p2527_p0 }
   0xa   :  { %2537 = shalt.err (!%p2534_p4)
}
   0xb   :  { %s2563_s18 = smov 512   ;;  %s2564_s19 = smov 32  }
   0xc   :  { %24 = dma.hbm_to_vmem [thread:$0]  %s3544_s1, 3072, %s19_s16, [#allocation4], %s2563_s18, %s2563_s18, %s2564_s19  }
   0xd   :  { %s2565_s22 = smov [#allocation5]  }
   0xe   :  { %s30_s23 = sshll.u32 %s2565_s22, 4  ;;  %s31_s23 = int_to_ptr.vmem [resolvable:$true] %s30_s23 }
   0xf   :  { %s2546_s24 = scalar_lea.vmem %s31_s23, 8192  ;;  %p2551_p6 = scmp.lt.s32.totalorder %s31_s23, %s31_s23 }
  0x10   :  { %p2547_p5 = scmp.ne.s32.totalorder %s31_s23, %s2546_s24  ;;  %p2552_p7 = scmp.lt.s32.totalorder %s2546_s24, %s2546_s24 }
  0x12   :  { %p2553_p8 = por %p2552_p7, %p2551_p6 }
  0x14   :  { %p2554_p9 = pnand %p2553_p8, %p2547_p5 }
  0x16   :  { %2557 = shalt.err (!%p2554_p9)
}
  0x17   :  { %36 = dma.hbm_to_vmem [thread:$0]  %s3545_s2, 8192, %s31_s23, [#allocation6], %s2563_s18, %s2563_s18, %s2564_s19  }
  0x18   :  { %2558 = dma.done.wait [#allocation4], 3072  }
  0x19   :  { %2559 = vsyncadd [#allocation4], 4294964224 }
  0x1a   :  { %2560 = dma.done.wait [#allocation6], 8192  }
  0x1b   :  { %2561 = vsyncadd [#allocation6], 4294959104  ;;  %v3548_v0 = vmov 0.0   ;;  %v74_v1 = vld [vmem:[#allocation3 + $0xa8] sm:$0xff]  ;;  %v76_v2 = vld [vmem:[#allocation3 + $0xb8] sm:$0xff]  ;;  %vm99_vm0 = vcmask 392192  }
  0x1c   :  { %188 = vmatprep.mubr.f32.mxu0 %v3548_v0  ;;  %301 = vmatprep.mubr.f32.mxu1 %v3548_v0  ;;  %v73_v3 = vld [vmem:[#allocation3 + $0xa0] sm:$0xff]  ;;  %v75_v4 = vld [vmem:[#allocation3 + $0xb0] sm:$0xff]  ;;  %v70_v5 = vld [vmem:[#allocation3 + $0x88] sm:$0xff] }
  0x1d   :  { %144 = vmatprep.subr.mxu0 %v74_v1  ;;  %257 = vmatprep.subr.mxu1 %v76_v2  ;;  %v72_v6 = vld [vmem:[#allocation3 + $0x98] sm:$0xff]  ;;  %v69_v7 = vld [vmem:[#allocation3 + $0x80] sm:$0xff]  ;;  %v71_v8 = vld [vmem:[#allocation3 + $0x90] sm:$0xff] }
  0x1e   :  { %145 = vmatpush1.msra.mxu0 %v73_v3  ;;  %258 = vmatpush1.msra.mxu1 %v75_v4  ;;  %v66_v9 = vld [vmem:[#allocation3 + $0x68] sm:$0xff]  ;;  %v68_v10 = vld [vmem:[#allocation3 + $0x78] sm:$0xff]  ;;  %v65_v11 = vld [vmem:[#allocation3 + $0x60] sm:$0xff] }
  0x1f   :  { %146 = vmatprep.subr.mxu0 %v70_v5  ;;  %259 = vmatprep.subr.mxu1 %v72_v6  ;;  %v67_v12 = vld [vmem:[#allocation3 + $0x70] sm:$0xff]  ;;  %v62_v13 = vld [vmem:[#allocation3 + $0x48] sm:$0xff]  ;;  %v64_v14 = vld [vmem:[#allocation3 + $0x58] sm:$0xff] }
  0x20   :  { %147 = vmatpush1.msra.mxu0 %v69_v7  ;;  %260 = vmatpush1.msra.mxu1 %v71_v8  ;;  %v61_v15 = vld [vmem:[#allocation3 + $0x40] sm:$0xff]  ;;  %v63_v16 = vld [vmem:[#allocation3 + $0x50] sm:$0xff]  ;;  %v58_v17 = vld [vmem:[#allocation3 + $0x28] sm:$0xff] }
  0x21   :  { %148 = vmatprep.subr.mxu0 %v66_v9  ;;  %261 = vmatprep.subr.mxu1 %v68_v10  ;;  %v60_v18 = vld [vmem:[#allocation3 + $0x38] sm:$0xff]  ;;  %v57_v19 = vld [vmem:[#allocation3 + $0x20] sm:$0xff]  ;;  %v59_v20 = vld [vmem:[#allocation3 + $0x30] sm:$0xff] }
  0x22   :  { %149 = vmatpush1.msra.mxu0 %v65_v11  ;;  %262 = vmatpush1.msra.mxu1 %v67_v12  ;;  %v54_v21 = vld [vmem:[#allocation3 + $0x8] sm:$0xff]  ;;  %v56_v22 = vld [vmem:[#allocation3 + $0x18] sm:$0xff]  ;;  %v53_v23 = vld [vmem:[#allocation3] sm:$0xff] }
  0x23   :  { %150 = vmatprep.subr.mxu0 %v62_v13  ;;  %263 = vmatprep.subr.mxu1 %v64_v14  ;;  %v55_v24 = vld [vmem:[#allocation3 + $0x10] sm:$0xff]  ;;  %v45_v25 = vld [vmem:[%s3543_s0] sm:$0xff]  ;;  %v2603_v26 = vld [vmem:[#allocation5 + $0x1e8] sm:$0xff] }
  0x24   :  { %151 = vmatpush1.msra.mxu0 %v61_v15  ;;  %264 = vmatpush1.msra.mxu1 %v63_v16  ;;  %v2605_v27 = vld [vmem:[#allocation5 + $0x1f8] sm:$0xff]  ;;  %v2607_v28 = vld [vmem:[#allocation5 + $0x1e0] sm:$0xff]  ;;  %v2609_v29 = vld [vmem:[#allocation5 + $0x1f0] sm:$0xff] }
  0x25   :  { %152 = vmatprep.subr.mxu0 %v58_v17  ;;  %265 = vmatprep.subr.mxu1 %v60_v18  ;;  %v2613_v30 = vld [vmem:[#allocation5 + $0x1c8] sm:$0xff]  ;;  %v2615_v31 = vld [vmem:[#allocation5 + $0x1d8] sm:$0xff]  ;;  %v2621_v32 = vld [vmem:[#allocation5 + $0x1c0] sm:$0xff] }
  0x26   :  { %153 = vmatpush1.msra.mxu0 %v57_v19  ;;  %266 = vmatpush1.msra.mxu1 %v59_v20  ;;  %v2623_v33 = vld [vmem:[#allocation5 + $0x1d0] sm:$0xff]  ;;  %v46_v34 = vld [vmem:[%s3543_s0 + $0x8] sm:$0xff]  ;;  %v2634_v36 = vld [vmem:[#allocation5 + $0x1b8] sm:$0xff] }
  0x27   :  { %154 = vmatprep.subr.mxu0 %v54_v21  ;;  %267 = vmatprep.subr.mxu1 %v56_v22  ;;  %v2632_v35 = vld [vmem:[#allocation5 + $0x1a8] sm:$0xff]  ;;  %v2638_v37 = vld [vmem:[#allocation5 + $0x1a0] sm:$0xff]  ;;  %v2640_v38 = vld [vmem:[#allocation5 + $0x1b0] sm:$0xff] }
  0x28   :  { %155 = vmatpush1.msra.mxu0 %v53_v23  ;;  %268 = vmatpush1.msra.mxu1 %v55_v24  ;;  %v2644_v39 = vld [vmem:[#allocation5 + $0x188] sm:$0xff]  ;;  %v2646_v40 = vld [vmem:[#allocation5 + $0x198] sm:$0xff]  ;;  %v2652_v41 = vld [vmem:[#allocation5 + $0x180] sm:$0xff] }
  0x29   :  { %2338 = vmatmul.mubr.msk.f32.vlgmr.msra.gmra.mxu0 %vm99_vm0, %v45_v25  ;;  %2346 = vmatmul.mubr.msk.f32.vlgmr.msra.gmra.mxu1 %vm99_vm0, %v45_v25  ;;  %v2654_v42 = vld [vmem:[#allocation5 + $0x190] sm:$0xff]  ;;  %v2663_v44 = vld [vmem:[#allocation5 + $0x168] sm:$0xff]  ;;  %v2665_v45 = vld [vmem:[#allocation5 + $0x178] sm:$0xff] }
  0x2a   :  { %453 = vmatprep.subr.mxu0 %v2603_v26  ;;  %524 = vmatprep.subr.mxu1 %v2605_v27  ;;  %v47_v43 = vld [vmem:[%s3543_s0 + $0x10] sm:$0xff]  ;;  %v2669_v46 = vld [vmem:[#allocation5 + $0x160] sm:$0xff]  ;;  %v2675_v48 = vld [vmem:[#allocation5 + $0x148] sm:$0xff] }
  0x2b   :  { %454 = vmatpush1.msra.mxu0 %v2607_v28  ;;  %525 = vmatpush1.msra.mxu1 %v2609_v29  ;;  %v2671_v47 = vld [vmem:[#allocation5 + $0x170] sm:$0xff]  ;;  %v2677_v49 = vld [vmem:[#allocation5 + $0x158] sm:$0xff]  ;;  %v2683_v50 = vld [vmem:[#allocation5 + $0x140] sm:$0xff] }
  0x2c   :  { %455 = vmatprep.subr.mxu0 %v2613_v30  ;;  %526 = vmatprep.subr.mxu1 %v2615_v31  ;;  %v2685_v51 = vld [vmem:[#allocation5 + $0x150] sm:$0xff]  ;;  %v48_v52 = vld [vmem:[%s3543_s0 + $0x18] sm:$0xff]  ;;  %v2694_v53 = vld [vmem:[#allocation5 + $0x128] sm:$0xff] }
  0x2d   :  { %194 = vmatprep.mubr.f32.mxu0 %v3548_v0  ;;  %307 = vmatprep.mubr.f32.mxu1 %v3548_v0  ;;  %v2696_v54 = vld [vmem:[#allocation5 + $0x138] sm:$0xff]  ;;  %v2700_v55 = vld [vmem:[#allocation5 + $0x120] sm:$0xff]  ;;  %v2702_v56 = vld [vmem:[#allocation5 + $0x130] sm:$0xff] }
  0x2e   :  { %456 = vmatpush1.msra.mxu0 %v2621_v32  ;;  %527 = vmatpush1.msra.mxu1 %v2623_v33  ;;  %v2706_v57 = vld [vmem:[#allocation5 + $0x108] sm:$0xff]  ;;  %v2708_v58 = vld [vmem:[#allocation5 + $0x118] sm:$0xff]  ;;  %v2714_v59 = vld [vmem:[#allocation5 + $0x100] sm:$0xff] }
  0x2f   :  { %2339 = vmatmul.mubr.msk.f32.gmra.mxu0 %vm99_vm0, %v46_v34  ;;  %2347 = vmatmul.mubr.msk.f32.gmra.mxu1 %vm99_vm0, %v46_v34  ;;  %v2716_v60 = vld [vmem:[#allocation5 + $0x110] sm:$0xff]  ;;  %v49_v61 = vld [vmem:[%s3543_s0 + $0x20] sm:$0xff]  ;;  %v2725_v62 = vld [vmem:[#allocation5 + $0xe8] sm:$0xff] }
  0x30   :  { %457 = vmatprep.subr.mxu0 %v2632_v35  ;;  %528 = vmatprep.subr.mxu1 %v2634_v36  ;;  %v2727_v63 = vld [vmem:[#allocation5 + $0xf8] sm:$0xff]  ;;  %v2731_v1 = vld [vmem:[#allocation5 + $0xe0] sm:$0xff]  ;;  %v2733_v2 = vld [vmem:[#allocation5 + $0xf0] sm:$0xff] }
  0x31   :  { %458 = vmatpush1.msra.mxu0 %v2638_v37  ;;  %529 = vmatpush1.msra.mxu1 %v2640_v38  ;;  %v2737_v3 = vld [vmem:[#allocation5 + $0xc8] sm:$0xff]  ;;  %v2739_v4 = vld [vmem:[#allocation5 + $0xd8] sm:$0xff]  ;;  %v2745_v5 = vld [vmem:[#allocation5 + $0xc0] sm:$0xff] }
  0x32   :  { %459 = vmatprep.subr.mxu0 %v2644_v39  ;;  %530 = vmatprep.subr.mxu1 %v2646_v40  ;;  %v2747_v6 = vld [vmem:[#allocation5 + $0xd0] sm:$0xff]  ;;  %v50_v7 = vld [vmem:[%s3543_s0 + $0x28] sm:$0xff]  ;;  %v2758_v9 = vld [vmem:[#allocation5 + $0xb8] sm:$0xff] }
  0x33   :  { %200 = vmatprep.mubr.f32.mxu0 %v3548_v0  ;;  %313 = vmatprep.mubr.f32.mxu1 %v3548_v0  ;;  %v2756_v8 = vld [vmem:[#allocation5 + $0xa8] sm:$0xff]  ;;  %v2762_v10 = vld [vmem:[#allocation5 + $0xa0] sm:$0xff]  ;;  %v2764_v11 = vld [vmem:[#allocation5 + $0xb0] sm:$0xff] }
  0x34   :  { %460 = vmatpush1.msra.mxu0 %v2652_v41  ;;  %531 = vmatpush1.msra.mxu1 %v2654_v42  ;;  %v2768_v12 = vld [vmem:[#allocation5 + $0x88] sm:$0xff]  ;;  %v2770_v13 = vld [vmem:[#allocation5 + $0x98] sm:$0xff]  ;;  %v2776_v14 = vld [vmem:[#allocation5 + $0x80] sm:$0xff] }
  0x35   :  { %2340 = vmatmul.mubr.msk.f32.gmra.mxu0 %vm99_vm0, %v47_v43  ;;  %2348 = vmatmul.mubr.msk.f32.gmra.mxu1 %vm99_vm0, %v47_v43  ;;  %3613 = vst [vmem:[#allocation9_spill] sm:$0xff] %v2768_v12  ;;  %3614 = vst [vmem:[#allocation10_spill] sm:$0xff] %v2770_v13  ;;  %v2778_v15 = vld [vmem:[#allocation5 + $0x90] sm:$0xff]  ;;  %v2787_v17 = vld [vmem:[#allocation5 + $0x68] sm:$0xff] }
  0x36   :  { %461 = vmatprep.subr.mxu0 %v2663_v44  ;;  %532 = vmatprep.subr.mxu1 %v2665_v45  ;;  %3615 = vst [vmem:[#allocation11_spill] sm:$0xff] %v2776_v14  ;;  %3616 = vst [vmem:[#allocation12_spill] sm:$0xff] %v2778_v15  ;;  %v51_v16 = vld [vmem:[%s3543_s0 + $0x30] sm:$0xff]  ;;  %v2789_v18 = vld [vmem:[#allocation5 + $0x78] sm:$0xff] }
  0x37   :  { %462 = vmatpush1.msra.mxu0 %v2669_v46  ;;  %533 = vmatpush1.msra.mxu1 %v2671_v47  ;;  %3617 = vst [vmem:[#allocation13_spill] sm:$0xff] %v2787_v17  ;;  %3618 = vst [vmem:[#allocation14_spill] sm:$0xff] %v2789_v18  ;;  %v2793_v19 = vld [vmem:[#allocation5 + $0x60] sm:$0xff]  ;;  %v2795_v20 = vld [vmem:[#allocation5 + $0x70] sm:$0xff] }
  0x38   :  { %463 = vmatprep.subr.mxu0 %v2675_v48  ;;  %534 = vmatprep.subr.mxu1 %v2677_v49  ;;  %3619 = vst [vmem:[#allocation15_spill] sm:$0xff] %v2793_v19  ;;  %3620 = vst [vmem:[#allocation16_spill] sm:$0xff] %v2795_v20  ;;  %v2799_v21 = vld [vmem:[#allocation5 + $0x48] sm:$0xff]  ;;  %v2801_v22 = vld [vmem:[#allocation5 + $0x58] sm:$0xff] }
  0x39   :  { %206 = vmatprep.mubr.f32.mxu0 %v3548_v0  ;;  %319 = vmatprep.mubr.f32.mxu1 %v3548_v0  ;;  %3621 = vst [vmem:[#allocation17_spill] sm:$0xff] %v2799_v21  ;;  %3622 = vst [vmem:[#allocation18_spill] sm:$0xff] %v2801_v22  ;;  %v2807_v23 = vld [vmem:[#allocation5 + $0x40] sm:$0xff]  ;;  %v2809_v24 = vld [vmem:[#allocation5 + $0x50] sm:$0xff] }
  0x3a   :  { %464 = vmatpush1.msra.mxu0 %v2683_v50  ;;  %535 = vmatpush1.msra.mxu1 %v2685_v51  ;;  %3623 = vst [vmem:[#allocation19_spill] sm:$0xff] %v2807_v23  ;;  %3624 = vst [vmem:[#allocation20_spill] sm:$0xff] %v2809_v24  ;;  %v52_v25 = vld [vmem:[%s3543_s0 + $0x38] sm:$0xff]  ;;  %v2818_v34 = vld [vmem:[#allocation5 + $0x28] sm:$0xff] }
  0x3b   :  { %2341 = vmatmul.mubr.msk.f32.gmra.mxu0 %vm99_vm0, %v48_v52  ;;  %2349 = vmatmul.mubr.msk.f32.gmra.mxu1 %vm99_vm0, %v48_v52  ;;  %3625 = vst [vmem:[#allocation21_spill] sm:$0xff] %v2818_v34  ;;  %v2820_v43 = vld [vmem:[#allocation5 + $0x38] sm:$0xff]  ;;  %v2824_v52 = vld [vmem:[#allocation5 + $0x20] sm:$0xff] }
  0x3c   :  { %465 = vmatprep.subr.mxu0 %v2694_v53  ;;  %536 = vmatprep.subr.mxu1 %v2696_v54  ;;  %3626 = vst [vmem:[#allocation22_spill] sm:$0xff] %v2820_v43  ;;  %3627 = vst [vmem:[#allocation23_spill] sm:$0xff] %v2824_v52 }
  0x3d   :  { %466 = vmatpush1.msra.mxu0 %v2700_v55  ;;  %537 = vmatpush1.msra.mxu1 %v2702_v56 }
  0x3e   :  { %467 = vmatprep.subr.mxu0 %v2706_v57  ;;  %538 = vmatprep.subr.mxu1 %v2708_v58 }
  0x3f   :  { %212 = vmatprep.mubr.f32.mxu0 %v3548_v0  ;;  %325 = vmatprep.mubr.f32.mxu1 %v3548_v0 }
  0x40   :  { %468 = vmatpush1.msra.mxu0 %v2714_v59  ;;  %539 = vmatpush1.msra.mxu1 %v2716_v60 }
  0x41   :  { %2342 = vmatmul.mubr.msk.f32.gmra.mxu0 %vm99_vm0, %v49_v61  ;;  %2350 = vmatmul.mubr.msk.f32.gmra.mxu1 %vm99_vm0, %v49_v61  ;;  %v2826_v61 = vld [vmem:[#allocation5 + $0x30] sm:$0xff] }
  0x42   :  { %469 = vmatprep.subr.mxu0 %v2725_v62  ;;  %540 = vmatprep.subr.mxu1 %v2727_v63  ;;  %3628 = vst [vmem:[#allocation24_spill] sm:$0xff] %v2826_v61 }
  0x43   :  { %470 = vmatpush1.msra.mxu0 %v2731_v1  ;;  %541 = vmatpush1.msra.mxu1 %v2733_v2 }
  0x44   :  { %471 = vmatprep.subr.mxu0 %v2737_v3  ;;  %542 = vmatprep.subr.mxu1 %v2739_v4 }
  0x45   :  { %218 = vmatprep.mubr.f32.mxu0 %v3548_v0  ;;  %331 = vmatprep.mubr.f32.mxu1 %v3548_v0 }
  0x46   :  { %472 = vmatpush1.msra.mxu0 %v2745_v5  ;;  %543 = vmatpush1.msra.mxu1 %v2747_v6 }
  0x47   :  { %2343 = vmatmul.mubr.msk.f32.gmra.mxu0 %vm99_vm0, %v50_v7  ;;  %2351 = vmatmul.mubr.msk.f32.gmra.mxu1 %vm99_vm0, %v50_v7  ;;  %v2830_v7 = vld [vmem:[#allocation5 + $0x8] sm:$0xff] }
  0x48   :  { %473 = vmatprep.subr.mxu0 %v2756_v8  ;;  %544 = vmatprep.subr.mxu1 %v2758_v9  ;;  %3629 = vst [vmem:[#allocation25_spill] sm:$0xff] %v2830_v7 }
  0x49   :  { %474 = vmatpush1.msra.mxu0 %v2762_v10  ;;  %545 = vmatpush1.msra.mxu1 %v2764_v11 }
  0x4a   :  { %475 = vmatprep.subr.mxu0 %v2768_v12  ;;  %546 = vmatprep.subr.mxu1 %v2770_v13 }
  0x4b   :  { %224 = vmatprep.mubr.f32.mxu0 %v3548_v0  ;;  %337 = vmatprep.mubr.f32.mxu1 %v3548_v0 }
  0x4c   :  { %476 = vmatpush1.msra.mxu0 %v2776_v14  ;;  %547 = vmatpush1.msra.mxu1 %v2778_v15 }
  0x4d   :  { %2344 = vmatmul.mubr.msk.f32.gmra.mxu0 %vm99_vm0, %v51_v16  ;;  %2352 = vmatmul.mubr.msk.f32.gmra.mxu1 %vm99_vm0, %v51_v16  ;;  %v2832_v16 = vld [vmem:[#allocation5 + $0x18] sm:$0xff] }
  0x4e   :  { %477 = vmatprep.subr.mxu0 %v2787_v17  ;;  %548 = vmatprep.subr.mxu1 %v2789_v18  ;;  %3630 = vst [vmem:[#allocation26_spill] sm:$0xff] %v2832_v16 }
  0x4f   :  { %478 = vmatpush1.msra.mxu0 %v2793_v19  ;;  %549 = vmatpush1.msra.mxu1 %v2795_v20 }
  0x50   :  { %479 = vmatprep.subr.mxu0 %v2799_v21  ;;  %550 = vmatprep.subr.mxu1 %v2801_v22 }
  0x51   :  { %230 = vmatprep.mubr.f32.mxu0 %v3548_v0  ;;  %343 = vmatprep.mubr.f32.mxu1 %v3548_v0  ;;  %v2836_v0 = vld [vmem:[#allocation5] sm:$0xff] }
  0x52   :  { %480 = vmatpush1.msra.mxu0 %v2807_v23  ;;  %551 = vmatpush1.msra.mxu1 %v2809_v24  ;;  %3631 = vst [vmem:[#allocation27_spill] sm:$0xff] %v2836_v0  ;;  %v2840_v24 = vld [vmem:[#allocation5 + $0x10] sm:$0xff] }
  0x53   :  { %2345 = vmatmul.mubr.msk.f32.gmra.mxu0 %vm99_vm0, %v52_v25  ;;  %2353 = vmatmul.mubr.msk.f32.gmra.mxu1 %vm99_vm0, %v52_v25  ;;  %3632 = vst [vmem:[#allocation28_spill] sm:$0xff] %v2840_v24  ;;  %v3633_v25 = vmov 0.0  }
  0x54   :  { %481 = vmatprep.subr.mxu0 %v2818_v34  ;;  %552 = vmatprep.subr.mxu1 %v2820_v43 }
  0x55   :  { %482 = vmatpush1.msra.mxu0 %v2824_v52  ;;  %553 = vmatpush1.msra.mxu1 %v2826_v61 }
  0x56   :  { %483 = vmatprep.subr.mxu0 %v2830_v7  ;;  %554 = vmatprep.subr.mxu1 %v2832_v16 }
  0x57   :  { %484 = vmatpush1.msra.mxu0 %v2836_v0  ;;  %517 = vmatprep.mubr.f32.mxu0 %v3633_v25 }
  0x58   :  { %555 = vmatpush1.msra.mxu1 %v2840_v24  ;;  %588 = vmatprep.mubr.f32.mxu1 %v3633_v25 }
  0x59   :  { %518 = vmatmul.mubr.f32.vlgmr.msra.gmra.mxu0 %v3633_v25  ;;  %589 = vmatmul.mubr.f32.vlgmr.msra.gmra.mxu1 %v3633_v25 }
  0x5a   :  { %695 = vmatprep.subr.mxu0 %v2603_v26  ;;  %766 = vmatprep.subr.mxu1 %v2605_v27 }
  0x5b   :  { %696 = vmatpush1.msra.mxu0 %v2607_v28  ;;  %767 = vmatpush1.msra.mxu1 %v2609_v29 }
  0x5c   :  { %697 = vmatprep.subr.mxu0 %v2613_v30  ;;  %768 = vmatprep.subr.mxu1 %v2615_v31 }
  0x5d   :  { %698 = vmatpush1.msra.mxu0 %v2621_v32  ;;  %769 = vmatpush1.msra.mxu1 %v2623_v33 }
  0x5e   :  { %699 = vmatprep.subr.mxu0 %v2632_v35  ;;  %770 = vmatprep.subr.mxu1 %v2634_v36 }
  0x5f   :  { %700 = vmatpush1.msra.mxu0 %v2638_v37  ;;  %771 = vmatpush1.msra.mxu1 %v2640_v38 }
  0x60   :  { %701 = vmatprep.subr.mxu0 %v2644_v39  ;;  %772 = vmatprep.subr.mxu1 %v2646_v40 }
  0x61   :  { %702 = vmatpush1.msra.mxu0 %v2652_v41  ;;  %773 = vmatpush1.msra.mxu1 %v2654_v42 }
  0x62   :  { %703 = vmatprep.subr.mxu0 %v2663_v44  ;;  %774 = vmatprep.subr.mxu1 %v2665_v45 }
  0x63   :  { %704 = vmatpush1.msra.mxu0 %v2669_v46  ;;  %775 = vmatpush1.msra.mxu1 %v2671_v47 }
  0x64   :  { %705 = vmatprep.subr.mxu0 %v2675_v48  ;;  %776 = vmatprep.subr.mxu1 %v2677_v49 }
  0x65   :  { %706 = vmatpush1.msra.mxu0 %v2683_v50  ;;  %777 = vmatpush1.msra.mxu1 %v2685_v51 }
  0x66   :  { %707 = vmatprep.subr.mxu0 %v2694_v53  ;;  %778 = vmatprep.subr.mxu1 %v2696_v54 }
  0x67   :  { %708 = vmatpush1.msra.mxu0 %v2700_v55  ;;  %779 = vmatpush1.msra.mxu1 %v2702_v56 }
  0x68   :  { %709 = vmatprep.subr.mxu0 %v2706_v57  ;;  %780 = vmatprep.subr.mxu1 %v2708_v58 }
  0x69   :  { %710 = vmatpush1.msra.mxu0 %v2714_v59  ;;  %781 = vmatpush1.msra.mxu1 %v2716_v60 }
  0x6a   :  { %711 = vmatprep.subr.mxu0 %v2725_v62  ;;  %782 = vmatprep.subr.mxu1 %v2727_v63 }
  0x6b   :  { %712 = vmatpush1.msra.mxu0 %v2731_v1  ;;  %783 = vmatpush1.msra.mxu1 %v2733_v2 }
  0x6c   :  { %713 = vmatprep.subr.mxu0 %v2737_v3  ;;  %784 = vmatprep.subr.mxu1 %v2739_v4 }
  0x6d   :  { %714 = vmatpush1.msra.mxu0 %v2745_v5  ;;  %785 = vmatpush1.msra.mxu1 %v2747_v6 }
  0x6e   :  { %715 = vmatprep.subr.mxu0 %v2756_v8  ;;  %786 = vmatprep.subr.mxu1 %v2758_v9 }
  0x6f   :  { %716 = vmatpush1.msra.mxu0 %v2762_v10  ;;  %787 = vmatpush1.msra.mxu1 %v2764_v11 }
  0x70   :  { %717 = vmatprep.subr.mxu0 %v2768_v12  ;;  %788 = vmatprep.subr.mxu1 %v2770_v13  ;;  %v3634_v12 = vld [vmem:[#allocation20_spill] sm:$0xff] }
  0x71   :  { %718 = vmatpush1.msra.mxu0 %v2776_v14  ;;  %789 = vmatpush1.msra.mxu1 %v2778_v15 }
  0x72   :  { %719 = vmatprep.subr.mxu0 %v2787_v17  ;;  %790 = vmatprep.subr.mxu1 %v2789_v18 }
  0x73   :  { %720 = vmatpush1.msra.mxu0 %v2793_v19  ;;  %791 = vmatpush1.msra.mxu1 %v2795_v20 }
  0x74   :  { %721 = vmatprep.subr.mxu0 %v2799_v21  ;;  %792 = vmatprep.subr.mxu1 %v2801_v22 }
  0x75   :  { %722 = vmatpush1.msra.mxu0 %v2807_v23  ;;  %793 = vmatpush1.msra.mxu1 %v3634_v12 }
  0x76   :  { %723 = vmatprep.subr.mxu0 %v2818_v34  ;;  %794 = vmatprep.subr.mxu1 %v2820_v43  ;;  %v79_v43 = vlaneseq }
  0x77   :  { %724 = vmatpush1.msra.mxu0 %v2824_v52  ;;  %795 = vmatpush1.msra.mxu1 %v2826_v61 }
  0x78   :  { %725 = vmatprep.subr.mxu0 %v2830_v7  ;;  %796 = vmatprep.subr.mxu1 %v2832_v16  ;;  %v80_v52 = vshrl.u32 %v79_v43, 7 }
  0x79   :  { %726 = vmatpush1.msra.mxu0 %v2836_v0  ;;  %759 = vmatprep.mubr.f32.mxu0 %v3633_v25  ;;  %v77_v0 = vld [vmem:[%s3546_s3] sm:$0xf] }
  0x7a   :  { %797 = vmatpush1.msra.mxu1 %v2840_v24  ;;  %830 = vmatprep.mubr.f32.mxu1 %v3633_v25  ;;  %v81_v7 = vsub.s32 0, %v80_v52  ;;  %v89_v16 = vsub.s32 2, %v80_v52  ;;  %v85_v25 = vsub.s32 1, %v80_v52 }
  0x7b   :  { %938 = vmatprep.subr.mxu0 %v2603_v26  ;;  %1009 = vmatprep.subr.mxu1 %v2605_v27  ;;  %v93_v26 = vsub.s32 3, %v80_v52 }
  0x7c   :  { %v82_v23 = vrot.slane %v77_v0, %v81_v7  ;;  %v2929_v27 = vrot.slane %v77_v0, %v89_v16  ;;  %v86_v21 = vrot.slane %v77_v0, %v85_v25 }
  0x7d   :  { %v2931_v20 = vrot.slane %v77_v0, %v93_v26 }
  0xe9   :  { %v2918_v34 = vpop.f32.mrf.mxu0  ;;  %v2920_v61 = vpop.f32.mrf.mxu1 }
  0xeb   :  { %v2925_v12 = vpop.f32.mrf.mxu0  ;;  %v2927_v24 = vpop.f32.mrf.mxu1 }
  0xef   :  { %v196_v43 = vpop.f32.mrf.mxu0  ;;  %v309_v22 = vpop.f32.mrf.mxu1 }
  0xf0   :  { %v2933_v19 = vadd.f32 %v196_v43, %v82_v23  ;;  %v2936_v18 = vadd.f32 %v309_v22, %v2929_v27 }
  0xf1   :  { %v198_v17 = vpop.f32.mrf.mxu0  ;;  %v311_v15 = vpop.f32.mrf.mxu1 }
  0xf2   :  { %3635 = vst [vmem:[#allocation29_spill] sm:$0xff] %v2933_v19  ;;  %3636 = vst [vmem:[#allocation30_spill] sm:$0xff] %v2936_v18  ;;  %v2938_v14 = vadd.f32 %v198_v17, %v86_v21  ;;  %v2941_v13 = vadd.f32 %v311_v15, %v2931_v20 }
  0xf4   :  { %3637 = vst [vmem:[#allocation31_spill] sm:$0xff] %v2938_v14  ;;  %3638 = vst [vmem:[#allocation32_spill] sm:$0xff] %v2941_v13 }
  0xf5   :  { %v202_v52 = vpop.f32.mrf.mxu0  ;;  %v315_v7 = vpop.f32.mrf.mxu1 }
  0xf6   :  { %v2943_v16 = vadd.f32 %v202_v52, %v82_v23  ;;  %v2946_v25 = vadd.f32 %v315_v7, %v2929_v27 }
  0xf7   :  { %v204_v0 = vpop.f32.mrf.mxu0  ;;  %v317_v26 = vpop.f32.mrf.mxu1 }
  0xf8   :  { %3639 = vst [vmem:[#allocation33_spill] sm:$0xff] %v2943_v16  ;;  %3640 = vst [vmem:[#allocation34_spill] sm:$0xff] %v2946_v25  ;;  %v2948_v43 = vadd.f32 %v204_v0, %v86_v21  ;;  %v2951_v22 = vadd.f32 %v317_v26, %v2931_v20 }
  0xfa   :  { %3641 = vst [vmem:[#allocation35_spill] sm:$0xff] %v2948_v43  ;;  %3642 = vst [vmem:[#allocation36_spill] sm:$0xff] %v2951_v22 }
  0xfb   :  { %v208_v18 = vpop.f32.mrf.mxu0  ;;  %v321_v17 = vpop.f32.mrf.mxu1 }
  0xfc   :  { %v2953_v14 = vadd.f32 %v208_v18, %v82_v23  ;;  %v2956_v15 = vadd.f32 %v321_v17, %v2929_v27 }
  0xfd   :  { %v210_v13 = vpop.f32.mrf.mxu0  ;;  %v323_v52 = vpop.f32.mrf.mxu1 }
  0xfe   :  { %3643 = vst [vmem:[#allocation37_spill] sm:$0xff] %v2953_v14  ;;  %3644 = vst [vmem:[#allocation38_spill] sm:$0xff] %v2956_v15  ;;  %v2958_v16 = vadd.f32 %v210_v13, %v86_v21  ;;  %v2961_v7 = vadd.f32 %v323_v52, %v2931_v20 }
 0x100   :  { %3645 = vst [vmem:[#allocation39_spill] sm:$0xff] %v2958_v16  ;;  %3646 = vst [vmem:[#allocation40_spill] sm:$0xff] %v2961_v7 }
 0x101   :  { %v214_v25 = vpop.f32.mrf.mxu0  ;;  %v327_v0 = vpop.f32.mrf.mxu1 }
 0x102   :  { %v2963_v43 = vadd.f32 %v214_v25, %v82_v23  ;;  %v2966_v26 = vadd.f32 %v327_v0, %v2929_v27 }
 0x103   :  { %v216_v22 = vpop.f32.mrf.mxu0  ;;  %v329_v18 = vpop.f32.mrf.mxu1 }
 0x104   :  { %3647 = vst [vmem:[#allocation41_spill] sm:$0xff] %v2963_v43  ;;  %3648 = vst [vmem:[#allocation42_spill] sm:$0xff] %v2966_v26  ;;  %v2968_v14 = vadd.f32 %v216_v22, %v86_v21  ;;  %v2971_v17 = vadd.f32 %v329_v18, %v2931_v20 }
 0x106   :  { %3649 = vst [vmem:[#allocation43_spill] sm:$0xff] %v2968_v14  ;;  %3650 = vst [vmem:[#allocation44_spill] sm:$0xff] %v2971_v17 }
 0x107   :  { %v220_v15 = vpop.f32.mrf.mxu0  ;;  %v333_v13 = vpop.f32.mrf.mxu1 }
 0x108   :  { %v2973_v16 = vadd.f32 %v220_v15, %v82_v23  ;;  %v2976_v52 = vadd.f32 %v333_v13, %v2929_v27 }
 0x109   :  { %v222_v7 = vpop.f32.mrf.mxu0  ;;  %v335_v25 = vpop.f32.mrf.mxu1 }
 0x10a   :  { %3651 = vst [vmem:[#allocation45_spill] sm:$0xff] %v2973_v16  ;;  %3652 = vst [vmem:[#allocation46_spill] sm:$0xff] %v2976_v52  ;;  %v2978_v43 = vadd.f32 %v222_v7, %v86_v21  ;;  %v2981_v0 = vadd.f32 %v335_v25, %v2931_v20 }
 0x10c   :  { %3653 = vst [vmem:[#allocation47_spill] sm:$0xff] %v2978_v43  ;;  %3654 = vst [vmem:[#allocation48_spill] sm:$0xff] %v2981_v0 }
 0x10d   :  { %v226_v26 = vpop.f32.mrf.mxu0  ;;  %v339_v22 = vpop.f32.mrf.mxu1 }
 0x10e   :  { %v2983_v14 = vadd.f32 %v226_v26, %v82_v23  ;;  %v2986_v18 = vadd.f32 %v339_v22, %v2929_v27 }
 0x10f   :  { %v228_v17 = vpop.f32.mrf.mxu0  ;;  %v341_v15 = vpop.f32.mrf.mxu1 }
 0x110   :  { %3655 = vst [vmem:[#allocation49_spill] sm:$0xff] %v2983_v14  ;;  %3656 = vst [vmem:[#allocation50_spill] sm:$0xff] %v2986_v18  ;;  %v2988_v16 = vadd.f32 %v228_v17, %v86_v21  ;;  %v2991_v13 = vadd.f32 %v341_v15, %v2931_v20  ;;  %v191_v17 = vadd.f32 %v2918_v34, %v82_v23 }
 0x111   :  { %v193_v15 = vadd.f32 %v2925_v12, %v86_v21 }
 0x112   :  { %3657 = vst [vmem:[#allocation51_spill] sm:$0xff] %v2988_v16  ;;  %3658 = vst [vmem:[#allocation52_spill] sm:$0xff] %v2991_v13 }
 0x113   :  { %v232_v52 = vpop.f32.mrf.mxu0  ;;  %v345_v7 = vpop.f32.mrf.mxu1 }
 0x114   :  { %v2993_v43 = vadd.f32 %v232_v52, %v82_v23  ;;  %v2996_v25 = vadd.f32 %v345_v7, %v2929_v27 }
 0x115   :  { %v234_v0 = vpop.f32.mrf.mxu0  ;;  %v347_v26 = vpop.f32.mrf.mxu1 }
 0x116   :  { %3659 = vst [vmem:[#allocation53_spill] sm:$0xff] %v2993_v43  ;;  %3660 = vst [vmem:[#allocation54_spill] sm:$0xff] %v2996_v25  ;;  %v2998_v14 = vadd.f32 %v234_v0, %v86_v21  ;;  %v3001_v22 = vadd.f32 %v347_v26, %v2931_v20  ;;  %v306_v0 = vadd.f32 %v2927_v24, %v2931_v20 }
 0x117   :  { %v304_v26 = vadd.f32 %v2920_v61, %v2929_v27 }
 0x118   :  { %3661 = vst [vmem:[#allocation55_spill] sm:$0xff] %v2998_v14  ;;  %3662 = vst [vmem:[#allocation56_spill] sm:$0xff] %v3001_v22 }
 0x119   :  { %v519_v18 = vpop.f32.mrf.mxu0  ;;  %v590_v43 = vpop.f32.mrf.mxu1 }
 0x11a   :  { %v595_v13 = vadd.f32 %v519_v18, %v191_v17  ;;  %v597_v22 = vadd.f32 %v590_v43, %v304_v26 }
 0x11b   :  { %v521_v16 = vpop.f32.mrf.mxu0  ;;  %v592_v25 = vpop.f32.mrf.mxu1 }
 0x11c   :  { %v2354_v19 = vmul.f32 -1.442695, %v595_v13  ;;  %v596_v52 = vadd.f32 %v521_v16, %v193_v15  ;;  %v598_v14 = vadd.f32 %v592_v25, %v306_v0 }
 0x11e   :  { %2390 = vpow2.f32 %v2354_v19  ;;  %v2355_v7 = vmul.f32 -1.442695, %v596_v52  ;;  %v2356_v23 = vmul.f32 -1.442695, %v598_v14 }
 0x120   :  { %2392 = vpow2.f32 %v2355_v7 }
 0x121   :  { %2394 = vpow2.f32 %v2356_v23 }
 0x12b   :  { %v2391_v34 = vpop.eup %2390 }
 0x12c   :  { %v602_v12 = vadd.f32 1.0, %v2391_v34 }
 0x12d   :  { %v2393_v21 = vpop.eup %2392 }
 0x12e   :  { %2396 = vrcp.f32 %v602_v12  ;;  %v608_v16 = vadd.f32 1.0, %v2393_v21  ;;  %v2395_v19 = vpop.eup %2394  ;;  %v3092_v21 = vld [vmem:[#allocation5 + $0x1e8] sm:$0xff] }
 0x12f   :  { %2398 = vtanh.f32 %v597_v22  ;;  %v615_v15 = vadd.f32 1.0, %v2395_v19  ;;  %v3098_v19 = vld [vmem:[#allocation5 + $0x1e0] sm:$0xff] }
 0x130   :  { %2400 = vrcp.f32 %v608_v16  ;;  %v3094_v16 = vld [vmem:[#allocation5 + $0x1f8] sm:$0xff] }
 0x131   :  { %2402 = vrcp.f32 %v615_v15  ;;  %v3110_v15 = vld [vmem:[#allocation5 + $0x1c0] sm:$0xff] }
 0x13b   :  { %v2397_v18 = vpop.eup %2396 }
 0x13c   :  { %v2399_v13 = vpop.eup %2398 }
 0x13d   :  { %v2401_v17 = vpop.eup %2400  ;;  %v619_v24 = vmul.f32 %v2399_v13, %v2397_v18  ;;  %v3100_v18 = vld [vmem:[#allocation5 + $0x1f0] sm:$0xff]  ;;  %v3104_v13 = vld [vmem:[#allocation5 + $0x1c8] sm:$0xff] }
 0x13e   :  { %v618_v20 = vmul.f32 0.0, %v2401_v17  ;;  %v2403_v14 = vpop.eup %2402  ;;  %v3106_v17 = vld [vmem:[#allocation5 + $0x1d8] sm:$0xff] }
 0x140   :  { %v3009_v25 = vadd.f32 %v619_v24, %v618_v20  ;;  %v3112_v20 = vld [vmem:[#allocation5 + $0x1d0] sm:$0xff]  ;;  %v3116_v24 = vld [vmem:[#allocation5 + $0x1a8] sm:$0xff] }
 0x142   :  { %2404 = vtanh.f32 %v3009_v25 }
 0x14f   :  { %v2405_v61 = vpop.eup %2404 }
 0x150   :  { %v622_v27 = vmul.f32 %v2405_v61, %v2403_v14  ;;  %v3122_v14 = vld [vmem:[#allocation5 + $0x1a0] sm:$0xff]  ;;  %v3124_v61 = vld [vmem:[#allocation5 + $0x1b0] sm:$0xff] }
 0x152   :  { %623 = vst [vmem:[%s3547_s4] sm:$0xff] %v622_v27  ;;  %760 = vmatmul.mubr.f32.vlgmr.msra.gmra.mxu0 %v622_v27  ;;  %831 = vmatmul.mubr.f32.vlgmr.msra.gmra.mxu1 %v622_v27  ;;  %v3128_v27 = vld [vmem:[#allocation5 + $0x188] sm:$0xff] }
 0x153   :  { %939 = vmatpush1.msra.mxu0 %v2607_v28  ;;  %1010 = vmatpush1.msra.mxu1 %v2609_v29  ;;  %v3663_v28 = vld [vmem:[#allocation9_spill] sm:$0xff]  ;;  %v3664_v29 = vld [vmem:[#allocation10_spill] sm:$0xff] }
 0x154   :  { %940 = vmatprep.subr.mxu0 %v2613_v30  ;;  %1011 = vmatprep.subr.mxu1 %v2615_v31  ;;  %v3665_v30 = vld [vmem:[#allocation11_spill] sm:$0xff]  ;;  %v3666_v31 = vld [vmem:[#allocation12_spill] sm:$0xff]  ;;  %3688 = vst [vmem:[#allocation9_spill] sm:$0xff] %v3092_v21  ;;  %3689 = vst [vmem:[#allocation10_spill] sm:$0xff] %v3094_v16 }
 0x155   :  { %941 = vmatpush1.msra.mxu0 %v2621_v32  ;;  %1012 = vmatpush1.msra.mxu1 %v2623_v33  ;;  %v3667_v32 = vld [vmem:[#allocation13_spill] sm:$0xff]  ;;  %v3668_v33 = vld [vmem:[#allocation14_spill] sm:$0xff] }
 0x156   :  { %942 = vmatprep.subr.mxu0 %v2632_v35  ;;  %1013 = vmatprep.subr.mxu1 %v2634_v36  ;;  %v3669_v35 = vld [vmem:[#allocation15_spill] sm:$0xff]  ;;  %v3670_v36 = vld [vmem:[#allocation16_spill] sm:$0xff] }
 0x157   :  { %943 = vmatpush1.msra.mxu0 %v2638_v37  ;;  %1014 = vmatpush1.msra.mxu1 %v2640_v38  ;;  %v3671_v37 = vld [vmem:[#allocation17_spill] sm:$0xff]  ;;  %v3672_v38 = vld [vmem:[#allocation18_spill] sm:$0xff] }
 0x158   :  { %944 = vmatprep.subr.mxu0 %v2644_v39  ;;  %1015 = vmatprep.subr.mxu1 %v2646_v40  ;;  %v3673_v39 = vld [vmem:[#allocation19_spill] sm:$0xff]  ;;  %v3674_v40 = vld [vmem:[#allocation20_spill] sm:$0xff] }
 0x159   :  { %945 = vmatpush1.msra.mxu0 %v2652_v41  ;;  %1016 = vmatpush1.msra.mxu1 %v2654_v42  ;;  %v3675_v41 = vld [vmem:[#allocation21_spill] sm:$0xff]  ;;  %v3676_v42 = vld [vmem:[#allocation22_spill] sm:$0xff] }
 0x15a   :  { %946 = vmatprep.subr.mxu0 %v2663_v44  ;;  %1017 = vmatprep.subr.mxu1 %v2665_v45  ;;  %v3677_v44 = vld [vmem:[#allocation23_spill] sm:$0xff]  ;;  %v3678_v45 = vld [vmem:[#allocation24_spill] sm:$0xff] }
 0x15b   :  { %947 = vmatpush1.msra.mxu0 %v2669_v46  ;;  %1018 = vmatpush1.msra.mxu1 %v2671_v47  ;;  %v3679_v46 = vld [vmem:[#allocation25_spill] sm:$0xff]  ;;  %v3680_v47 = vld [vmem:[#allocation26_spill] sm:$0xff] }
 0x15c   :  { %948 = vmatprep.subr.mxu0 %v2675_v48  ;;  %1019 = vmatprep.subr.mxu1 %v2677_v49  ;;  %v3681_v48 = vld [vmem:[#allocation27_spill] sm:$0xff]  ;;  %v3682_v49 = vmov 0.0  }
 0x15d   :  { %949 = vmatpush1.msra.mxu0 %v2683_v50  ;;  %1020 = vmatpush1.msra.mxu1 %v2685_v51  ;;  %v3683_v50 = vld [vmem:[#allocation28_spill] sm:$0xff] }
 0x15e   :  { %950 = vmatprep.subr.mxu0 %v2694_v53  ;;  %1021 = vmatprep.subr.mxu1 %v2696_v54  ;;  %v3684_v53 = vld [vmem:[#allocation29_spill] sm:$0xff] }
 0x15f   :  { %951 = vmatpush1.msra.mxu0 %v2700_v55  ;;  %1022 = vmatpush1.msra.mxu1 %v2702_v56 }
 0x160   :  { %952 = vmatprep.subr.mxu0 %v2706_v57  ;;  %1023 = vmatprep.subr.mxu1 %v2708_v58  ;;  %v3685_v57 = vld [vmem:[#allocation31_spill] sm:$0xff] }
 0x161   :  { %953 = vmatpush1.msra.mxu0 %v2714_v59  ;;  %1024 = vmatpush1.msra.mxu1 %v2716_v60 }
 0x162   :  { %954 = vmatprep.subr.mxu0 %v2725_v62  ;;  %1025 = vmatprep.subr.mxu1 %v2727_v63  ;;  %v3686_v63 = vld [vmem:[#allocation32_spill] sm:$0xff] }
 0x163   :  { %955 = vmatpush1.msra.mxu0 %v2731_v1  ;;  %1026 = vmatpush1.msra.mxu1 %v2733_v2  ;;  %v3687_v2 = vld [vmem:[#allocation30_spill] sm:$0xff] }
 0x164   :  { %956 = vmatprep.subr.mxu0 %v2737_v3  ;;  %1027 = vmatprep.subr.mxu1 %v2739_v4 }
 0x165   :  { %957 = vmatpush1.msra.mxu0 %v2745_v5  ;;  %1028 = vmatpush1.msra.mxu1 %v2747_v6 }
 0x166   :  { %958 = vmatprep.subr.mxu0 %v2756_v8  ;;  %1029 = vmatprep.subr.mxu1 %v2758_v9 }
 0x167   :  { %959 = vmatpush1.msra.mxu0 %v2762_v10  ;;  %1030 = vmatpush1.msra.mxu1 %v2764_v11 }
 0x168   :  { %960 = vmatprep.subr.mxu0 %v3663_v28  ;;  %1031 = vmatprep.subr.mxu1 %v3664_v29  ;;  %v3130_v28 = vld [vmem:[#allocation5 + $0x198] sm:$0xff]  ;;  %v3134_v29 = vld [vmem:[#allocation5 + $0x180] sm:$0xff] }
 0x169   :  { %961 = vmatpush1.msra.mxu0 %v3665_v30  ;;  %1032 = vmatpush1.msra.mxu1 %v3666_v31  ;;  %v3136_v30 = vld [vmem:[#allocation5 + $0x190] sm:$0xff]  ;;  %v3140_v31 = vld [vmem:[#allocation5 + $0x168] sm:$0xff] }
 0x16a   :  { %962 = vmatprep.subr.mxu0 %v3667_v32  ;;  %1033 = vmatprep.subr.mxu1 %v3668_v33  ;;  %v3142_v32 = vld [vmem:[#allocation5 + $0x178] sm:$0xff]  ;;  %v3146_v33 = vld [vmem:[#allocation5 + $0x160] sm:$0xff] }
 0x16b   :  { %963 = vmatpush1.msra.mxu0 %v3669_v35  ;;  %1034 = vmatpush1.msra.mxu1 %v3670_v36  ;;  %v3148_v35 = vld [vmem:[#allocation5 + $0x170] sm:$0xff]  ;;  %v3152_v36 = vld [vmem:[#allocation5 + $0x148] sm:$0xff] }
 0x16c   :  { %964 = vmatprep.subr.mxu0 %v3671_v37  ;;  %1035 = vmatprep.subr.mxu1 %v3672_v38  ;;  %v3154_v37 = vld [vmem:[#allocation5 + $0x158] sm:$0xff]  ;;  %v3158_v38 = vld [vmem:[#allocation5 + $0x140] sm:$0xff] }
 0x16d   :  { %965 = vmatpush1.msra.mxu0 %v3673_v39  ;;  %1036 = vmatpush1.msra.mxu1 %v3674_v40  ;;  %v3160_v39 = vld [vmem:[#allocation5 + $0x150] sm:$0xff]  ;;  %v3164_v40 = vld [vmem:[#allocation5 + $0x128] sm:$0xff] }
 0x16e   :  { %966 = vmatprep.subr.mxu0 %v3675_v41  ;;  %1037 = vmatprep.subr.mxu1 %v3676_v42  ;;  %v3166_v41 = vld [vmem:[#allocation5 + $0x138] sm:$0xff]  ;;  %v3170_v42 = vld [vmem:[#allocation5 + $0x120] sm:$0xff] }
 0x16f   :  { %967 = vmatpush1.msra.mxu0 %v3677_v44  ;;  %1038 = vmatpush1.msra.mxu1 %v3678_v45  ;;  %v3172_v44 = vld [vmem:[#allocation5 + $0x130] sm:$0xff]  ;;  %v3176_v45 = vld [vmem:[#allocation5 + $0x108] sm:$0xff] }
 0x170   :  { %968 = vmatprep.subr.mxu0 %v3679_v46  ;;  %1039 = vmatprep.subr.mxu1 %v3680_v47  ;;  %v3178_v46 = vld [vmem:[#allocation5 + $0x118] sm:$0xff]  ;;  %v3180_v47 = vld [vmem:[#allocation5 + $0x100] sm:$0xff] }
 0x171   :  { %969 = vmatpush1.msra.mxu0 %v3681_v48  ;;  %1002 = vmatprep.mubr.f32.mxu0 %v3682_v49  ;;  %v3184_v48 = vld [vmem:[#allocation5 + $0x110] sm:$0xff] }
 0x172   :  { %1040 = vmatpush1.msra.mxu1 %v3683_v50  ;;  %1073 = vmatprep.mubr.f32.mxu1 %v3682_v49  ;;  %v3186_v50 = vld [vmem:[#allocation5 + $0xe8] sm:$0xff] }
 0x173   :  { %1181 = vmatprep.subr.mxu0 %v3092_v21  ;;  %1252 = vmatprep.subr.mxu1 %v3094_v16 }
 0x212   :  { %v761_v51 = vpop.f32.mrf.mxu0  ;;  %v832_v59 = vpop.f32.mrf.mxu1 }
 0x213   :  { %v837_v54 = vadd.f32 %v761_v51, %v3684_v53  ;;  %v839_v3 = vadd.f32 %v832_v59, %v3687_v2  ;;  %v3188_v51 = vld [vmem:[#allocation5 + $0xf8] sm:$0xff]  ;;  %v3192_v53 = vld [vmem:[#allocation5 + $0xe0] sm:$0xff]  ;;  %v3208_v59 = vld [vmem:[#allocation5 + $0xa8] sm:$0xff] }
 0x214   :  { %v763_v55 = vpop.f32.mrf.mxu0  ;;  %v834_v62 = vpop.f32.mrf.mxu1  ;;  %v3222_v2 = vld [vmem:[#allocation5 + $0x98] sm:$0xff] }
 0x215   :  { %v2357_v56 = vmul.f32 -1.442695, %v837_v54  ;;  %v838_v58 = vadd.f32 %v763_v55, %v3685_v57  ;;  %v840_v1 = vadd.f32 %v834_v62, %v3686_v63  ;;  %v3194_v54 = vld [vmem:[#allocation5 + $0xf0] sm:$0xff]  ;;  %v3196_v55 = vld [vmem:[#allocation5 + $0xc8] sm:$0xff]  ;;  %v3202_v57 = vld [vmem:[#allocation5 + $0xc0] sm:$0xff] }
 0x216   :  { %v3214_v62 = vld [vmem:[#allocation5 + $0xa0] sm:$0xff]  ;;  %v3216_v63 = vld [vmem:[#allocation5 + $0xb0] sm:$0xff] }
 0x217   :  { %2406 = vpow2.f32 %v2357_v56  ;;  %v2358_v60 = vmul.f32 -1.442695, %v838_v58  ;;  %v2359_v4 = vmul.f32 -1.442695, %v840_v1  ;;  %v3200_v56 = vld [vmem:[#allocation5 + $0xd8] sm:$0xff]  ;;  %v3204_v58 = vld [vmem:[#allocation5 + $0xd0] sm:$0xff] }
 0x218   :  { %v3220_v1 = vld [vmem:[#allocation5 + $0x88] sm:$0xff] }
 0x219   :  { %2408 = vpow2.f32 %v2358_v60  ;;  %v3210_v60 = vld [vmem:[#allocation5 + $0xb8] sm:$0xff] }
 0x21a   :  { %2410 = vtanh.f32 %v839_v3  ;;  %v3226_v3 = vld [vmem:[#allocation5 + $0x80] sm:$0xff] }
 0x21b   :  { %2412 = vpow2.f32 %v2359_v4  ;;  %v3228_v4 = vld [vmem:[#allocation5 + $0x90] sm:$0xff] }
 0x21c   :  { %3690 = vst [vmem:[#allocation11_spill] sm:$0xff] %v3228_v4 }
 0x224   :  { %v2407_v5 = vpop.eup %2406 }
 0x225   :  { %v844_v6 = vadd.f32 1.0, %v2407_v5  ;;  %v3232_v5 = vld [vmem:[#allocation5 + $0x68] sm:$0xff] }
 0x226   :  { %v2409_v8 = vpop.eup %2408  ;;  %3691 = vst [vmem:[#allocation12_spill] sm:$0xff] %v3232_v5 }
 0x227   :  { %2414 = vrcp.f32 %v844_v6  ;;  %v850_v9 = vadd.f32 1.0, %v2409_v8  ;;  %v2411_v10 = vpop.eup %2410  ;;  %v3234_v6 = vld [vmem:[#allocation5 + $0x78] sm:$0xff]  ;;  %v3238_v8 = vld [vmem:[#allocation5 + $0x60] sm:$0xff] }
 0x228   :  { %v2413_v11 = vpop.eup %2412  ;;  %3692 = vst [vmem:[#allocation13_spill] sm:$0xff] %v3234_v6  ;;  %3693 = vst [vmem:[#allocation14_spill] sm:$0xff] %v3238_v8 }
 0x229   :  { %2416 = vrcp.f32 %v850_v9  ;;  %v857_v7 = vadd.f32 1.0, %v2413_v11  ;;  %v3240_v9 = vld [vmem:[#allocation5 + $0x70] sm:$0xff]  ;;  %v3246_v11 = vld [vmem:[#allocation5 + $0x58] sm:$0xff] }
 0x22a   :  { %3694 = vst [vmem:[#allocation15_spill] sm:$0xff] %v3240_v9  ;;  %3696 = vst [vmem:[#allocation17_spill] sm:$0xff] %v3246_v11 }
 0x22b   :  { %2418 = vrcp.f32 %v857_v7  ;;  %v3258_v7 = vld [vmem:[#allocation5 + $0x38] sm:$0xff] }
 0x22c   :  { %3700 = vst [vmem:[#allocation21_spill] sm:$0xff] %v3258_v7 }
 0x234   :  { %v2415_v43 = vpop.eup %2414 }
 0x235   :  { %v861_v22 = vmul.f32 %v2415_v43, %v2411_v10  ;;  %v3244_v10 = vld [vmem:[#allocation5 + $0x48] sm:$0xff]  ;;  %v3250_v43 = vld [vmem:[#allocation5 + $0x40] sm:$0xff] }
 0x236   :  { %v2417_v52 = vpop.eup %2416  ;;  %3695 = vst [vmem:[#allocation16_spill] sm:$0xff] %v3244_v10  ;;  %3697 = vst [vmem:[#allocation18_spill] sm:$0xff] %v3250_v43 }
 0x237   :  { %v860_v0 = vmul.f32 %v2417_v52, %v3009_v25  ;;  %v3118_v25 = vld [vmem:[#allocation5 + $0x1b8] sm:$0xff]  ;;  %v3256_v52 = vld [vmem:[#allocation5 + $0x28] sm:$0xff] }
 0x238   :  { %v2419_v23 = vpop.eup %2418  ;;  %3699 = vst [vmem:[#allocation20_spill] sm:$0xff] %v3256_v52 }
 0x239   :  { %v3084_v26 = vadd.f32 %v861_v22, %v860_v0  ;;  %v3252_v22 = vld [vmem:[#allocation5 + $0x50] sm:$0xff]  ;;  %v3262_v0 = vld [vmem:[#allocation5 + $0x20] sm:$0xff] }
 0x23a   :  { %3698 = vst [vmem:[#allocation19_spill] sm:$0xff] %v3252_v22  ;;  %3701 = vst [vmem:[#allocation22_spill] sm:$0xff] %v3262_v0 }
 0x23b   :  { %2420 = vtanh.f32 %v3084_v26 }
 0x248   :  { %v2421_v34 = vpop.eup %2420 }
 0x249   :  { %v864_v12 = vmul.f32 %v2421_v34, %v2419_v23  ;;  %v3264_v23 = vld [vmem:[#allocation5 + $0x30] sm:$0xff]  ;;  %v3268_v34 = vld [vmem:[#allocation5 + $0x8] sm:$0xff] }
 0x24a   :  { %3702 = vst [vmem:[#allocation23_spill] sm:$0xff] %v3264_v23  ;;  %3703 = vst [vmem:[#allocation24_spill] sm:$0xff] %v3268_v34 }
 0x24b   :  { %2360 = vst [vmem:[%s3547_s4 + $0x8] sm:$0xff] %v864_v12  ;;  %1003 = vmatmul.mubr.f32.vlgmr.msra.gmra.mxu0 %v864_v12  ;;  %1074 = vmatmul.mubr.f32.vlgmr.msra.gmra.mxu1 %v864_v12  ;;  %v3270_v12 = vld [vmem:[#allocation5 + $0x18] sm:$0xff] }
 0x24c   :  { %1245 = vmatprep.mubr.f32.mxu0 %v3682_v49  ;;  %1316 = vmatprep.mubr.f32.mxu1 %v3682_v49  ;;  %3704 = vst [vmem:[#allocation25_spill] sm:$0xff] %v3270_v12  ;;  %v3274_v49 = vld [vmem:[#allocation5] sm:$0xff] }
 0x24d   :  { %1182 = vmatpush1.msra.mxu0 %v3098_v19  ;;  %1253 = vmatpush1.msra.mxu1 %v3100_v18  ;;  %3705 = vst [vmem:[#allocation26_spill] sm:$0xff] %v3274_v49 }
 0x24e   :  { %1183 = vmatprep.subr.mxu0 %v3104_v13  ;;  %1254 = vmatprep.subr.mxu1 %v3106_v17 }
 0x24f   :  { %1184 = vmatpush1.msra.mxu0 %v3110_v15  ;;  %1255 = vmatpush1.msra.mxu1 %v3112_v20 }
 0x250   :  { %1185 = vmatprep.subr.mxu0 %v3116_v24  ;;  %1256 = vmatprep.subr.mxu1 %v3118_v25 }
 0x251   :  { %1186 = vmatpush1.msra.mxu0 %v3122_v14  ;;  %1257 = vmatpush1.msra.mxu1 %v3124_v61 }
 0x252   :  { %1187 = vmatprep.subr.mxu0 %v3128_v27  ;;  %1258 = vmatprep.subr.mxu1 %v3130_v28 }
 0x253   :  { %1188 = vmatpush1.msra.mxu0 %v3134_v29  ;;  %1259 = vmatpush1.msra.mxu1 %v3136_v30 }
 0x254   :  { %1189 = vmatprep.subr.mxu0 %v3140_v31  ;;  %1260 = vmatprep.subr.mxu1 %v3142_v32 }
 0x255   :  { %1190 = vmatpush1.msra.mxu0 %v3146_v33  ;;  %1261 = vmatpush1.msra.mxu1 %v3148_v35 }
 0x256   :  { %1191 = vmatprep.subr.mxu0 %v3152_v36  ;;  %1262 = vmatprep.subr.mxu1 %v3154_v37 }
 0x257   :  { %1192 = vmatpush1.msra.mxu0 %v3158_v38  ;;  %1263 = vmatpush1.msra.mxu1 %v3160_v39 }
 0x258   :  { %1193 = vmatprep.subr.mxu0 %v3164_v40  ;;  %1264 = vmatprep.subr.mxu1 %v3166_v41 }
 0x259   :  { %1194 = vmatpush1.msra.mxu0 %v3170_v42  ;;  %1265 = vmatpush1.msra.mxu1 %v3172_v44 }
 0x25a   :  { %1195 = vmatprep.subr.mxu0 %v3176_v45  ;;  %1266 = vmatprep.subr.mxu1 %v3178_v46 }
 0x25b   :  { %1196 = vmatpush1.msra.mxu0 %v3180_v47  ;;  %1267 = vmatpush1.msra.mxu1 %v3184_v48 }
 0x25c   :  { %1197 = vmatprep.subr.mxu0 %v3186_v50  ;;  %1268 = vmatprep.subr.mxu1 %v3188_v51 }
 0x25d   :  { %1198 = vmatpush1.msra.mxu0 %v3192_v53  ;;  %1269 = vmatpush1.msra.mxu1 %v3194_v54 }
 0x25e   :  { %1199 = vmatprep.subr.mxu0 %v3196_v55  ;;  %1270 = vmatprep.subr.mxu1 %v3200_v56 }
 0x25f   :  { %1200 = vmatpush1.msra.mxu0 %v3202_v57  ;;  %1271 = vmatpush1.msra.mxu1 %v3204_v58 }
 0x260   :  { %1201 = vmatprep.subr.mxu0 %v3208_v59  ;;  %1272 = vmatprep.subr.mxu1 %v3210_v60 }
 0x261   :  { %1202 = vmatpush1.msra.mxu0 %v3214_v62  ;;  %1273 = vmatpush1.msra.mxu1 %v3216_v63 }
 0x262   :  { %1203 = vmatprep.subr.mxu0 %v3220_v1  ;;  %1274 = vmatprep.subr.mxu1 %v3222_v2 }
 0x263   :  { %1204 = vmatpush1.msra.mxu0 %v3226_v3  ;;  %1275 = vmatpush1.msra.mxu1 %v3228_v4 }
 0x264   :  { %1205 = vmatprep.subr.mxu0 %v3232_v5  ;;  %1276 = vmatprep.subr.mxu1 %v3234_v6  ;;  %v3710_v6 = vld [vmem:[#allocation34_spill] sm:$0xff] }
 0x265   :  { %1206 = vmatpush1.msra.mxu0 %v3238_v8  ;;  %1277 = vmatpush1.msra.mxu1 %v3240_v9  ;;  %v3709_v8 = vld [vmem:[#allocation36_spill] sm:$0xff] }
 0x266   :  { %1207 = vmatprep.subr.mxu0 %v3244_v10  ;;  %1278 = vmatprep.subr.mxu1 %v3246_v11  ;;  %v3276_v10 = vld [vmem:[#allocation5 + $0x10] sm:$0xff] }
 0x267   :  { %1208 = vmatpush1.msra.mxu0 %v3250_v43  ;;  %1279 = vmatpush1.msra.mxu1 %v3252_v22  ;;  %3706 = vst [vmem:[#allocation27_spill] sm:$0xff] %v3276_v10 }
 0x268   :  { %1209 = vmatprep.subr.mxu0 %v3256_v52  ;;  %1280 = vmatprep.subr.mxu1 %v3258_v7  ;;  %v3707_v52 = vld [vmem:[#allocation33_spill] sm:$0xff] }
 0x269   :  { %1210 = vmatpush1.msra.mxu0 %v3262_v0  ;;  %1281 = vmatpush1.msra.mxu1 %v3264_v23  ;;  %v3708_v0 = vld [vmem:[#allocation35_spill] sm:$0xff] }
 0x26a   :  { %1211 = vmatprep.subr.mxu0 %v3268_v34  ;;  %1282 = vmatprep.subr.mxu1 %v3270_v12 }
 0x26b   :  { %1212 = vmatpush1.msra.mxu0 %v3274_v49  ;;  %1283 = vmatpush1.msra.mxu1 %v3276_v10 }
 0x26c   :  { %1424 = vmatprep.subr.mxu0 %v3092_v21  ;;  %1495 = vmatprep.subr.mxu1 %v3094_v16 }
 0x30b   :  { %v1004_v7 = vpop.f32.mrf.mxu0  ;;  %v1075_v23 = vpop.f32.mrf.mxu1 }
 0x30c   :  { %v1080_v22 = vadd.f32 %v1004_v7, %v3707_v52  ;;  %v1082_v10 = vadd.f32 %v1075_v23, %v3710_v6  ;;  %v3716_v23 = vld [vmem:[#allocation16_spill] sm:$0xff] }
 0x30d   :  { %v1006_v43 = vpop.f32.mrf.mxu0  ;;  %v1077_v12 = vpop.f32.mrf.mxu1 }
 0x30e   :  { %v2361_v11 = vmul.f32 -1.442695, %v1080_v22  ;;  %v1081_v9 = vadd.f32 %v1006_v43, %v3708_v0  ;;  %v1083_v49 = vadd.f32 %v1077_v12, %v3709_v8  ;;  %v3717_v12 = vld [vmem:[#allocation17_spill] sm:$0xff] }
 0x310   :  { %2422 = vpow2.f32 %v2361_v11  ;;  %v2362_v34 = vmul.f32 -1.442695, %v1081_v9  ;;  %v2363_v5 = vmul.f32 -1.442695, %v1083_v49 }
 0x312   :  { %2424 = vpow2.f32 %v2362_v34 }
 0x313   :  { %2426 = vtanh.f32 %v1082_v10  ;;  %v3715_v10 = vld [vmem:[#allocation15_spill] sm:$0xff] }
 0x314   :  { %2428 = vpow2.f32 %v2363_v5  ;;  %v3714_v5 = vld [vmem:[#allocation14_spill] sm:$0xff] }
 0x31d   :  { %v2423_v21 = vpop.eup %2422 }
 0x31e   :  { %v1087_v4 = vadd.f32 1.0, %v2423_v21 }
 0x31f   :  { %v2425_v16 = vpop.eup %2424 }
 0x320   :  { %2430 = vrcp.f32 %v1087_v4  ;;  %v1093_v52 = vadd.f32 1.0, %v2425_v16  ;;  %v2427_v22 = vpop.eup %2426  ;;  %v3712_v16 = vld [vmem:[#allocation12_spill] sm:$0xff]  ;;  %v3713_v4 = vld [vmem:[#allocation13_spill] sm:$0xff] }
 0x321   :  { %v2429_v43 = vpop.eup %2428 }
 0x322   :  { %2432 = vrcp.f32 %v1093_v52  ;;  %v1100_v0 = vadd.f32 1.0, %v2429_v43  ;;  %v3718_v52 = vld [vmem:[#allocation18_spill] sm:$0xff]  ;;  %v3720_v43 = vld [vmem:[#allocation20_spill] sm:$0xff] }
 0x324   :  { %2434 = vrcp.f32 %v1100_v0  ;;  %v3724_v0 = vld [vmem:[#allocation24_spill] sm:$0xff] }
 0x32d   :  { %v2431_v11 = vpop.eup %2430 }
 0x32e   :  { %v1104_v7 = vmul.f32 %v2431_v11, %v2427_v22  ;;  %v3719_v22 = vld [vmem:[#allocation19_spill] sm:$0xff]  ;;  %v3721_v11 = vld [vmem:[#allocation21_spill] sm:$0xff] }
 0x32f   :  { %v2433_v9 = vpop.eup %2432 }
 0x330   :  { %v1103_v34 = vmul.f32 %v2433_v9, %v3084_v26  ;;  %v3711_v26 = vld [vmem:[#allocation11_spill] sm:$0xff] }
 0x331   :  { %v2435_v49 = vpop.eup %2434  ;;  %v3723_v9 = vld [vmem:[#allocation23_spill] sm:$0xff] }
 0x332   :  { %v3291_v8 = vadd.f32 %v1104_v7, %v1103_v34  ;;  %v3722_v7 = vld [vmem:[#allocation22_spill] sm:$0xff]  ;;  %v3725_v34 = vld [vmem:[#allocation25_spill] sm:$0xff] }
 0x334   :  { %2436 = vtanh.f32 %v3291_v8 }
 0x341   :  { %v2437_v21 = vpop.eup %2436 }
 0x342   :  { %v1107_v6 = vmul.f32 %v2437_v21, %v2435_v49  ;;  %v3726_v49 = vld [vmem:[#allocation26_spill] sm:$0xff]  ;;  %v3727_v21 = vmov 0.0  }
 0x344   :  { %2364 = vst [vmem:[%s3547_s4 + $0x10] sm:$0xff] %v1107_v6  ;;  %1246 = vmatmul.mubr.f32.vlgmr.msra.gmra.mxu0 %v1107_v6  ;;  %1317 = vmatmul.mubr.f32.vlgmr.msra.gmra.mxu1 %v1107_v6  ;;  %v3728_v6 = vld [vmem:[#allocation27_spill] sm:$0xff] }
 0x345   :  { %1425 = vmatpush1.msra.mxu0 %v3098_v19  ;;  %1496 = vmatpush1.msra.mxu1 %v3100_v18 }
 0x346   :  { %1426 = vmatprep.subr.mxu0 %v3104_v13  ;;  %1497 = vmatprep.subr.mxu1 %v3106_v17 }
 0x347   :  { %1427 = vmatpush1.msra.mxu0 %v3110_v15  ;;  %1498 = vmatpush1.msra.mxu1 %v3112_v20 }
 0x348   :  { %1428 = vmatprep.subr.mxu0 %v3116_v24  ;;  %1499 = vmatprep.subr.mxu1 %v3118_v25 }
 0x349   :  { %1429 = vmatpush1.msra.mxu0 %v3122_v14  ;;  %1500 = vmatpush1.msra.mxu1 %v3124_v61 }
 0x34a   :  { %1430 = vmatprep.subr.mxu0 %v3128_v27  ;;  %1501 = vmatprep.subr.mxu1 %v3130_v28 }
 0x34b   :  { %1431 = vmatpush1.msra.mxu0 %v3134_v29  ;;  %1502 = vmatpush1.msra.mxu1 %v3136_v30 }
 0x34c   :  { %1432 = vmatprep.subr.mxu0 %v3140_v31  ;;  %1503 = vmatprep.subr.mxu1 %v3142_v32 }
 0x34d   :  { %1433 = vmatpush1.msra.mxu0 %v3146_v33  ;;  %1504 = vmatpush1.msra.mxu1 %v3148_v35 }
 0x34e   :  { %1434 = vmatprep.subr.mxu0 %v3152_v36  ;;  %1505 = vmatprep.subr.mxu1 %v3154_v37 }
 0x34f   :  { %1435 = vmatpush1.msra.mxu0 %v3158_v38  ;;  %1506 = vmatpush1.msra.mxu1 %v3160_v39 }
 0x350   :  { %1436 = vmatprep.subr.mxu0 %v3164_v40  ;;  %1507 = vmatprep.subr.mxu1 %v3166_v41 }
 0x351   :  { %1437 = vmatpush1.msra.mxu0 %v3170_v42  ;;  %1508 = vmatpush1.msra.mxu1 %v3172_v44 }
 0x352   :  { %1438 = vmatprep.subr.mxu0 %v3176_v45  ;;  %1509 = vmatprep.subr.mxu1 %v3178_v46 }
 0x353   :  { %1439 = vmatpush1.msra.mxu0 %v3180_v47  ;;  %1510 = vmatpush1.msra.mxu1 %v3184_v48 }
 0x354   :  { %1440 = vmatprep.subr.mxu0 %v3186_v50  ;;  %1511 = vmatprep.subr.mxu1 %v3188_v51 }
 0x355   :  { %1441 = vmatpush1.msra.mxu0 %v3192_v53  ;;  %1512 = vmatpush1.msra.mxu1 %v3194_v54 }
 0x356   :  { %1442 = vmatprep.subr.mxu0 %v3196_v55  ;;  %1513 = vmatprep.subr.mxu1 %v3200_v56 }
 0x357   :  { %1443 = vmatpush1.msra.mxu0 %v3202_v57  ;;  %1514 = vmatpush1.msra.mxu1 %v3204_v58 }
 0x358   :  { %1444 = vmatprep.subr.mxu0 %v3208_v59  ;;  %1515 = vmatprep.subr.mxu1 %v3210_v60 }
 0x359   :  { %1445 = vmatpush1.msra.mxu0 %v3214_v62  ;;  %1516 = vmatpush1.msra.mxu1 %v3216_v63 }
 0x35a   :  { %1446 = vmatprep.subr.mxu0 %v3220_v1  ;;  %1517 = vmatprep.subr.mxu1 %v3222_v2 }
 0x35b   :  { %1447 = vmatpush1.msra.mxu0 %v3226_v3  ;;  %1518 = vmatpush1.msra.mxu1 %v3711_v26 }
 0x35c   :  { %1448 = vmatprep.subr.mxu0 %v3712_v16  ;;  %1519 = vmatprep.subr.mxu1 %v3713_v4  ;;  %v3734_v4 = vld [vmem:[#allocation38_spill] sm:$0xff] }
 0x35d   :  { %1449 = vmatpush1.msra.mxu0 %v3714_v5  ;;  %1520 = vmatpush1.msra.mxu1 %v3715_v10  ;;  %v3733_v5 = vld [vmem:[#allocation40_spill] sm:$0xff] }
 0x35e   :  { %1450 = vmatprep.subr.mxu0 %v3716_v23  ;;  %1521 = vmatprep.subr.mxu1 %v3717_v12 }
 0x35f   :  { %1451 = vmatpush1.msra.mxu0 %v3718_v52  ;;  %1522 = vmatpush1.msra.mxu1 %v3719_v22  ;;  %v3729_v22 = vld [vmem:[#allocation9_spill] sm:$0xff] }
 0x360   :  { %1452 = vmatprep.subr.mxu0 %v3720_v43  ;;  %1523 = vmatprep.subr.mxu1 %v3721_v11  ;;  %v3730_v43 = vld [vmem:[#allocation10_spill] sm:$0xff] }
 0x361   :  { %1453 = vmatpush1.msra.mxu0 %v3722_v7  ;;  %1524 = vmatpush1.msra.mxu1 %v3723_v9  ;;  %v3731_v7 = vld [vmem:[#allocation37_spill] sm:$0xff] }
 0x362   :  { %1454 = vmatprep.subr.mxu0 %v3724_v0  ;;  %1525 = vmatprep.subr.mxu1 %v3725_v34  ;;  %v3732_v0 = vld [vmem:[#allocation39_spill] sm:$0xff] }
 0x363   :  { %1455 = vmatpush1.msra.mxu0 %v3726_v49  ;;  %1488 = vmatprep.mubr.f32.mxu0 %v3727_v21 }
 0x364   :  { %1526 = vmatpush1.msra.mxu1 %v3728_v6  ;;  %1559 = vmatprep.mubr.f32.mxu1 %v3727_v21 }
 0x365   :  { %1667 = vmatprep.subr.mxu0 %v3729_v22  ;;  %1738 = vmatprep.subr.mxu1 %v3730_v43 }
 0x404   :  { %v1247_v11 = vpop.f32.mrf.mxu0  ;;  %v1318_v34 = vpop.f32.mrf.mxu1 }
 0x405   :  { %v1323_v52 = vadd.f32 %v1247_v11, %v3731_v7  ;;  %v1325_v21 = vadd.f32 %v1318_v34, %v3734_v4  ;;  %v3739_v34 = vld [vmem:[#allocation15_spill] sm:$0xff] }
 0x406   :  { %v1249_v9 = vpop.f32.mrf.mxu0  ;;  %v1320_v10 = vpop.f32.mrf.mxu1 }
 0x407   :  { %v2365_v12 = vmul.f32 -1.442695, %v1323_v52  ;;  %v1324_v23 = vadd.f32 %v1249_v9, %v3732_v0  ;;  %v1326_v6 = vadd.f32 %v1320_v10, %v3733_v5 }
 0x409   :  { %2438 = vpow2.f32 %v2365_v12  ;;  %v2366_v49 = vmul.f32 -1.442695, %v1324_v23  ;;  %v2367_v16 = vmul.f32 -1.442695, %v1326_v6  ;;  %v3741_v6 = vld [vmem:[#allocation17_spill] sm:$0xff] }
 0x40b   :  { %2440 = vpow2.f32 %v2366_v49 }
 0x40c   :  { %2442 = vtanh.f32 %v1325_v21  ;;  %v3740_v21 = vld [vmem:[#allocation16_spill] sm:$0xff] }
 0x40d   :  { %2444 = vpow2.f32 %v2367_v16  ;;  %v3737_v16 = vld [vmem:[#allocation13_spill] sm:$0xff] }
 0x416   :  { %v2439_v22 = vpop.eup %2438 }
 0x417   :  { %v1330_v26 = vadd.f32 1.0, %v2439_v22 }
 0x418   :  { %v2441_v43 = vpop.eup %2440 }
 0x419   :  { %2446 = vrcp.f32 %v1330_v26  ;;  %v1336_v11 = vadd.f32 1.0, %v2441_v43  ;;  %v2443_v52 = vpop.eup %2442  ;;  %v3736_v26 = vld [vmem:[#allocation12_spill] sm:$0xff]  ;;  %v3738_v43 = vld [vmem:[#allocation14_spill] sm:$0xff] }
 0x41a   :  { %v2445_v7 = vpop.eup %2444 }
 0x41b   :  { %2448 = vrcp.f32 %v1336_v11  ;;  %v1343_v0 = vadd.f32 1.0, %v2445_v7  ;;  %v3742_v11 = vld [vmem:[#allocation18_spill] sm:$0xff]  ;;  %v3744_v7 = vld [vmem:[#allocation20_spill] sm:$0xff] }
 0x41d   :  { %2450 = vrcp.f32 %v1343_v0  ;;  %v3748_v0 = vld [vmem:[#allocation24_spill] sm:$0xff] }
 0x426   :  { %v2447_v12 = vpop.eup %2446 }
 0x427   :  { %v1347_v9 = vmul.f32 %v2447_v12, %v2443_v52  ;;  %v3743_v52 = vld [vmem:[#allocation19_spill] sm:$0xff]  ;;  %v3745_v12 = vld [vmem:[#allocation21_spill] sm:$0xff] }
 0x428   :  { %v2449_v23 = vpop.eup %2448 }
 0x429   :  { %v1346_v49 = vmul.f32 %v2449_v23, %v3291_v8  ;;  %v3735_v8 = vld [vmem:[#allocation11_spill] sm:$0xff] }
 0x42a   :  { %v2451_v4 = vpop.eup %2450  ;;  %v3747_v23 = vld [vmem:[#allocation23_spill] sm:$0xff] }
 0x42b   :  { %v3368_v5 = vadd.f32 %v1347_v9, %v1346_v49  ;;  %v3746_v9 = vld [vmem:[#allocation22_spill] sm:$0xff]  ;;  %v3749_v49 = vld [vmem:[#allocation25_spill] sm:$0xff] }
 0x42d   :  { %2452 = vtanh.f32 %v3368_v5 }
 0x43a   :  { %v2453_v10 = vpop.eup %2452 }
 0x43b   :  { %v1350_v22 = vmul.f32 %v2453_v10, %v2451_v4  ;;  %v3750_v4 = vld [vmem:[#allocation26_spill] sm:$0xff]  ;;  %v3751_v10 = vmov 0.0  }
 0x43d   :  { %2368 = vst [vmem:[%s3547_s4 + $0x18] sm:$0xff] %v1350_v22  ;;  %1489 = vmatmul.mubr.f32.vlgmr.msra.gmra.mxu0 %v1350_v22  ;;  %1560 = vmatmul.mubr.f32.vlgmr.msra.gmra.mxu1 %v1350_v22  ;;  %v3752_v22 = vld [vmem:[#allocation27_spill] sm:$0xff] }
 0x43e   :  { %1668 = vmatpush1.msra.mxu0 %v3098_v19  ;;  %1739 = vmatpush1.msra.mxu1 %v3100_v18 }
 0x43f   :  { %1669 = vmatprep.subr.mxu0 %v3104_v13  ;;  %1740 = vmatprep.subr.mxu1 %v3106_v17 }
 0x440   :  { %1670 = vmatpush1.msra.mxu0 %v3110_v15  ;;  %1741 = vmatpush1.msra.mxu1 %v3112_v20 }
 0x441   :  { %1671 = vmatprep.subr.mxu0 %v3116_v24  ;;  %1742 = vmatprep.subr.mxu1 %v3118_v25 }
 0x442   :  { %1672 = vmatpush1.msra.mxu0 %v3122_v14  ;;  %1743 = vmatpush1.msra.mxu1 %v3124_v61 }
 0x443   :  { %1673 = vmatprep.subr.mxu0 %v3128_v27  ;;  %1744 = vmatprep.subr.mxu1 %v3130_v28 }
 0x444   :  { %1674 = vmatpush1.msra.mxu0 %v3134_v29  ;;  %1745 = vmatpush1.msra.mxu1 %v3136_v30 }
 0x445   :  { %1675 = vmatprep.subr.mxu0 %v3140_v31  ;;  %1746 = vmatprep.subr.mxu1 %v3142_v32 }
 0x446   :  { %1676 = vmatpush1.msra.mxu0 %v3146_v33  ;;  %1747 = vmatpush1.msra.mxu1 %v3148_v35 }
 0x447   :  { %1677 = vmatprep.subr.mxu0 %v3152_v36  ;;  %1748 = vmatprep.subr.mxu1 %v3154_v37 }
 0x448   :  { %1678 = vmatpush1.msra.mxu0 %v3158_v38  ;;  %1749 = vmatpush1.msra.mxu1 %v3160_v39 }
 0x449   :  { %1679 = vmatprep.subr.mxu0 %v3164_v40  ;;  %1750 = vmatprep.subr.mxu1 %v3166_v41 }
 0x44a   :  { %1680 = vmatpush1.msra.mxu0 %v3170_v42  ;;  %1751 = vmatpush1.msra.mxu1 %v3172_v44 }
 0x44b   :  { %1681 = vmatprep.subr.mxu0 %v3176_v45  ;;  %1752 = vmatprep.subr.mxu1 %v3178_v46 }
 0x44c   :  { %1682 = vmatpush1.msra.mxu0 %v3180_v47  ;;  %1753 = vmatpush1.msra.mxu1 %v3184_v48 }
 0x44d   :  { %1683 = vmatprep.subr.mxu0 %v3186_v50  ;;  %1754 = vmatprep.subr.mxu1 %v3188_v51 }
 0x44e   :  { %1684 = vmatpush1.msra.mxu0 %v3192_v53  ;;  %1755 = vmatpush1.msra.mxu1 %v3194_v54 }
 0x44f   :  { %1685 = vmatprep.subr.mxu0 %v3196_v55  ;;  %1756 = vmatprep.subr.mxu1 %v3200_v56 }
 0x450   :  { %1686 = vmatpush1.msra.mxu0 %v3202_v57  ;;  %1757 = vmatpush1.msra.mxu1 %v3204_v58 }
 0x451   :  { %1687 = vmatprep.subr.mxu0 %v3208_v59  ;;  %1758 = vmatprep.subr.mxu1 %v3210_v60 }
 0x452   :  { %1688 = vmatpush1.msra.mxu0 %v3214_v62  ;;  %1759 = vmatpush1.msra.mxu1 %v3216_v63 }
 0x453   :  { %1689 = vmatprep.subr.mxu0 %v3220_v1  ;;  %1760 = vmatprep.subr.mxu1 %v3222_v2 }
 0x454   :  { %1690 = vmatpush1.msra.mxu0 %v3226_v3  ;;  %1761 = vmatpush1.msra.mxu1 %v3735_v8 }
 0x455   :  { %1691 = vmatprep.subr.mxu0 %v3736_v26  ;;  %1762 = vmatprep.subr.mxu1 %v3737_v16  ;;  %v3758_v16 = vld [vmem:[#allocation42_spill] sm:$0xff] }
 0x456   :  { %1692 = vmatpush1.msra.mxu0 %v3738_v43  ;;  %1763 = vmatpush1.msra.mxu1 %v3739_v34  ;;  %v3757_v43 = vld [vmem:[#allocation44_spill] sm:$0xff] }
 0x457   :  { %1693 = vmatprep.subr.mxu0 %v3740_v21  ;;  %1764 = vmatprep.subr.mxu1 %v3741_v6 }
 0x458   :  { %1694 = vmatpush1.msra.mxu0 %v3742_v11  ;;  %1765 = vmatpush1.msra.mxu1 %v3743_v52  ;;  %v3753_v52 = vld [vmem:[#allocation9_spill] sm:$0xff] }
 0x459   :  { %1695 = vmatprep.subr.mxu0 %v3744_v7  ;;  %1766 = vmatprep.subr.mxu1 %v3745_v12  ;;  %v3754_v7 = vld [vmem:[#allocation10_spill] sm:$0xff] }
 0x45a   :  { %1696 = vmatpush1.msra.mxu0 %v3746_v9  ;;  %1767 = vmatpush1.msra.mxu1 %v3747_v23  ;;  %v3755_v9 = vld [vmem:[#allocation41_spill] sm:$0xff] }
 0x45b   :  { %1697 = vmatprep.subr.mxu0 %v3748_v0  ;;  %1768 = vmatprep.subr.mxu1 %v3749_v49  ;;  %v3756_v0 = vld [vmem:[#allocation43_spill] sm:$0xff] }
 0x45c   :  { %1698 = vmatpush1.msra.mxu0 %v3750_v4  ;;  %1731 = vmatprep.mubr.f32.mxu0 %v3751_v10 }
 0x45d   :  { %1769 = vmatpush1.msra.mxu1 %v3752_v22  ;;  %1802 = vmatprep.mubr.f32.mxu1 %v3751_v10 }
 0x45e   :  { %1910 = vmatprep.subr.mxu0 %v3753_v52  ;;  %1981 = vmatprep.subr.mxu1 %v3754_v7 }
 0x4fd   :  { %v1490_v12 = vpop.f32.mrf.mxu0  ;;  %v1561_v49 = vpop.f32.mrf.mxu1 }
 0x4fe   :  { %v1566_v11 = vadd.f32 %v1490_v12, %v3755_v9  ;;  %v1568_v10 = vadd.f32 %v1561_v49, %v3758_v16 }
 0x4ff   :  { %v1492_v23 = vpop.f32.mrf.mxu0  ;;  %v1563_v34 = vpop.f32.mrf.mxu1 }
 0x500   :  { %v2369_v6 = vmul.f32 -1.442695, %v1566_v11  ;;  %v1567_v21 = vadd.f32 %v1492_v23, %v3756_v0  ;;  %v1569_v22 = vadd.f32 %v1563_v34, %v3757_v43 }
 0x502   :  { %2454 = vpow2.f32 %v2369_v6  ;;  %v2370_v4 = vmul.f32 -1.442695, %v1567_v21  ;;  %v2371_v26 = vmul.f32 -1.442695, %v1569_v22  ;;  %v2152_v22 = vld [vmem:[#allocation5 + $0x1f8] sm:$0xff] }
 0x504   :  { %2456 = vpow2.f32 %v2370_v4 }
 0x505   :  { %2458 = vtanh.f32 %v1568_v10  ;;  %v2150_v10 = vld [vmem:[#allocation5 + $0x1e8] sm:$0xff] }
 0x506   :  { %2460 = vpow2.f32 %v2371_v26 }
 0x50f   :  { %v2455_v52 = vpop.eup %2454 }
 0x510   :  { %v1573_v8 = vadd.f32 1.0, %v2455_v52  ;;  %v2149_v52 = vld [vmem:[#allocation5 + $0x1e0] sm:$0xff] }
 0x511   :  { %v2457_v7 = vpop.eup %2456 }
 0x512   :  { %2462 = vrcp.f32 %v1573_v8  ;;  %v1579_v12 = vadd.f32 1.0, %v2457_v7  ;;  %v2459_v11 = vpop.eup %2458  ;;  %v2151_v7 = vld [vmem:[#allocation5 + $0x1f0] sm:$0xff] }
 0x513   :  { %v2461_v9 = vpop.eup %2460 }
 0x514   :  { %2464 = vrcp.f32 %v1579_v12  ;;  %v1586_v0 = vadd.f32 1.0, %v2461_v9  ;;  %v2146_v12 = vld [vmem:[#allocation5 + $0x1c8] sm:$0xff]  ;;  %v2145_v9 = vld [vmem:[#allocation5 + $0x1c0] sm:$0xff] }
 0x516   :  { %2466 = vrcp.f32 %v1586_v0  ;;  %v2141_v0 = vld [vmem:[#allocation5 + $0x1a0] sm:$0xff] }
 0x51f   :  { %v2463_v6 = vpop.eup %2462 }
 0x520   :  { %v1590_v23 = vmul.f32 %v2463_v6, %v2459_v11  ;;  %v2148_v11 = vld [vmem:[#allocation5 + $0x1d8] sm:$0xff]  ;;  %v2147_v6 = vld [vmem:[#allocation5 + $0x1d0] sm:$0xff] }
 0x521   :  { %v2465_v21 = vpop.eup %2464 }
 0x522   :  { %v1589_v4 = vmul.f32 %v2465_v21, %v3368_v5  ;;  %v2144_v21 = vld [vmem:[#allocation5 + $0x1b8] sm:$0xff] }
 0x523   :  { %v2467_v16 = vpop.eup %2466 }
 0x524   :  { %v3445_v43 = vadd.f32 %v1590_v23, %v1589_v4  ;;  %v2142_v23 = vld [vmem:[#allocation5 + $0x1a8] sm:$0xff]  ;;  %v2143_v4 = vld [vmem:[#allocation5 + $0x1b0] sm:$0xff] }
 0x526   :  { %2468 = vtanh.f32 %v3445_v43 }
 0x533   :  { %v2469_v34 = vpop.eup %2468 }
 0x534   :  { %v1593_v49 = vmul.f32 %v2469_v34, %v2467_v16  ;;  %v2140_v16 = vld [vmem:[#allocation5 + $0x198] sm:$0xff]  ;;  %v2137_v34 = vld [vmem:[#allocation5 + $0x180] sm:$0xff] }
 0x536   :  { %2372 = vst [vmem:[%s3547_s4 + $0x20] sm:$0xff] %v1593_v49  ;;  %1732 = vmatmul.mubr.f32.vlgmr.msra.gmra.mxu0 %v1593_v49  ;;  %1803 = vmatmul.mubr.f32.vlgmr.msra.gmra.mxu1 %v1593_v49  ;;  %v2139_v49 = vld [vmem:[#allocation5 + $0x190] sm:$0xff] }
 0x537   :  { %1911 = vmatpush1.msra.mxu0 %v3098_v19  ;;  %1982 = vmatpush1.msra.mxu1 %v3100_v18  ;;  %v3759_v19 = vld [vmem:[#allocation11_spill] sm:$0xff]  ;;  %v3760_v18 = vld [vmem:[#allocation12_spill] sm:$0xff] }
 0x538   :  { %1912 = vmatprep.subr.mxu0 %v3104_v13  ;;  %1983 = vmatprep.subr.mxu1 %v3106_v17  ;;  %v3761_v13 = vld [vmem:[#allocation13_spill] sm:$0xff]  ;;  %v3762_v17 = vld [vmem:[#allocation14_spill] sm:$0xff] }
 0x539   :  { %1913 = vmatpush1.msra.mxu0 %v3110_v15  ;;  %1984 = vmatpush1.msra.mxu1 %v3112_v20  ;;  %v3763_v15 = vld [vmem:[#allocation15_spill] sm:$0xff]  ;;  %v3764_v20 = vld [vmem:[#allocation16_spill] sm:$0xff] }
 0x53a   :  { %1914 = vmatprep.subr.mxu0 %v3116_v24  ;;  %1985 = vmatprep.subr.mxu1 %v3118_v25  ;;  %v3765_v24 = vld [vmem:[#allocation17_spill] sm:$0xff]  ;;  %v3766_v25 = vld [vmem:[#allocation18_spill] sm:$0xff] }
 0x53b   :  { %1915 = vmatpush1.msra.mxu0 %v3122_v14  ;;  %1986 = vmatpush1.msra.mxu1 %v3124_v61  ;;  %v3767_v14 = vld [vmem:[#allocation19_spill] sm:$0xff]  ;;  %v3768_v61 = vld [vmem:[#allocation20_spill] sm:$0xff] }
 0x53c   :  { %1916 = vmatprep.subr.mxu0 %v3128_v27  ;;  %1987 = vmatprep.subr.mxu1 %v3130_v28  ;;  %v3769_v27 = vld [vmem:[#allocation21_spill] sm:$0xff]  ;;  %v3770_v28 = vld [vmem:[#allocation22_spill] sm:$0xff] }
 0x53d   :  { %1917 = vmatpush1.msra.mxu0 %v3134_v29  ;;  %1988 = vmatpush1.msra.mxu1 %v3136_v30  ;;  %v3771_v29 = vld [vmem:[#allocation23_spill] sm:$0xff]  ;;  %v3772_v30 = vld [vmem:[#allocation24_spill] sm:$0xff] }
 0x53e   :  { %1918 = vmatprep.subr.mxu0 %v3140_v31  ;;  %1989 = vmatprep.subr.mxu1 %v3142_v32  ;;  %v3773_v31 = vld [vmem:[#allocation25_spill] sm:$0xff]  ;;  %v3774_v32 = vld [vmem:[#allocation26_spill] sm:$0xff] }
 0x53f   :  { %1919 = vmatpush1.msra.mxu0 %v3146_v33  ;;  %1990 = vmatpush1.msra.mxu1 %v3148_v35  ;;  %v3775_v33 = vmov 0.0   ;;  %v3776_v35 = vld [vmem:[#allocation27_spill] sm:$0xff] }
 0x540   :  { %1920 = vmatprep.subr.mxu0 %v3152_v36  ;;  %1991 = vmatprep.subr.mxu1 %v3154_v37  ;;  %v3777_v37 = vld [vmem:[#allocation45_spill] sm:$0xff] }
 0x541   :  { %1921 = vmatpush1.msra.mxu0 %v3158_v38  ;;  %1992 = vmatpush1.msra.mxu1 %v3160_v39 }
 0x542   :  { %1922 = vmatprep.subr.mxu0 %v3164_v40  ;;  %1993 = vmatprep.subr.mxu1 %v3166_v41  ;;  %v3778_v41 = vld [vmem:[#allocation47_spill] sm:$0xff] }
 0x543   :  { %1923 = vmatpush1.msra.mxu0 %v3170_v42  ;;  %1994 = vmatpush1.msra.mxu1 %v3172_v44 }
 0x544   :  { %1924 = vmatprep.subr.mxu0 %v3176_v45  ;;  %1995 = vmatprep.subr.mxu1 %v3178_v46 }
 0x545   :  { %1925 = vmatpush1.msra.mxu0 %v3180_v47  ;;  %1996 = vmatpush1.msra.mxu1 %v3184_v48  ;;  %v3779_v47 = vld [vmem:[#allocation48_spill] sm:$0xff] }
 0x546   :  { %1926 = vmatprep.subr.mxu0 %v3186_v50  ;;  %1997 = vmatprep.subr.mxu1 %v3188_v51  ;;  %v3780_v50 = vld [vmem:[#allocation46_spill] sm:$0xff] }
 0x547   :  { %1927 = vmatpush1.msra.mxu0 %v3192_v53  ;;  %1998 = vmatpush1.msra.mxu1 %v3194_v54 }
 0x548   :  { %1928 = vmatprep.subr.mxu0 %v3196_v55  ;;  %1999 = vmatprep.subr.mxu1 %v3200_v56 }
 0x549   :  { %1929 = vmatpush1.msra.mxu0 %v3202_v57  ;;  %2000 = vmatpush1.msra.mxu1 %v3204_v58 }
 0x54a   :  { %1930 = vmatprep.subr.mxu0 %v3208_v59  ;;  %2001 = vmatprep.subr.mxu1 %v3210_v60 }
 0x54b   :  { %1931 = vmatpush1.msra.mxu0 %v3214_v62  ;;  %2002 = vmatpush1.msra.mxu1 %v3216_v63 }
 0x54c   :  { %1932 = vmatprep.subr.mxu0 %v3220_v1  ;;  %2003 = vmatprep.subr.mxu1 %v3222_v2 }
 0x54d   :  { %1933 = vmatpush1.msra.mxu0 %v3226_v3  ;;  %2004 = vmatpush1.msra.mxu1 %v3759_v19  ;;  %v2134_v19 = vld [vmem:[#allocation5 + $0x168] sm:$0xff] }
 0x54e   :  { %1934 = vmatprep.subr.mxu0 %v3760_v18  ;;  %2005 = vmatprep.subr.mxu1 %v3761_v13  ;;  %v2136_v18 = vld [vmem:[#allocation5 + $0x178] sm:$0xff]  ;;  %v2133_v13 = vld [vmem:[#allocation5 + $0x160] sm:$0xff] }
 0x54f   :  { %1935 = vmatpush1.msra.mxu0 %v3762_v17  ;;  %2006 = vmatpush1.msra.mxu1 %v3763_v15  ;;  %v2135_v17 = vld [vmem:[#allocation5 + $0x170] sm:$0xff]  ;;  %v2130_v15 = vld [vmem:[#allocation5 + $0x148] sm:$0xff] }
 0x550   :  { %1936 = vmatprep.subr.mxu0 %v3764_v20  ;;  %2007 = vmatprep.subr.mxu1 %v3765_v24  ;;  %v2132_v20 = vld [vmem:[#allocation5 + $0x158] sm:$0xff]  ;;  %v2129_v24 = vld [vmem:[#allocation5 + $0x140] sm:$0xff] }
 0x551   :  { %1937 = vmatpush1.msra.mxu0 %v3766_v25  ;;  %2008 = vmatpush1.msra.mxu1 %v3767_v14  ;;  %v2131_v25 = vld [vmem:[#allocation5 + $0x150] sm:$0xff]  ;;  %v2126_v14 = vld [vmem:[#allocation5 + $0x128] sm:$0xff] }
 0x552   :  { %1938 = vmatprep.subr.mxu0 %v3768_v61  ;;  %2009 = vmatprep.subr.mxu1 %v3769_v27  ;;  %v2128_v61 = vld [vmem:[#allocation5 + $0x138] sm:$0xff]  ;;  %v2125_v27 = vld [vmem:[#allocation5 + $0x120] sm:$0xff] }
 0x553   :  { %1939 = vmatpush1.msra.mxu0 %v3770_v28  ;;  %2010 = vmatpush1.msra.mxu1 %v3771_v29  ;;  %v2127_v28 = vld [vmem:[#allocation5 + $0x130] sm:$0xff]  ;;  %v2122_v29 = vld [vmem:[#allocation5 + $0x108] sm:$0xff] }
 0x554   :  { %1940 = vmatprep.subr.mxu0 %v3772_v30  ;;  %2011 = vmatprep.subr.mxu1 %v3773_v31  ;;  %v2124_v30 = vld [vmem:[#allocation5 + $0x118] sm:$0xff]  ;;  %v2121_v31 = vld [vmem:[#allocation5 + $0x100] sm:$0xff] }
 0x555   :  { %1941 = vmatpush1.msra.mxu0 %v3774_v32  ;;  %1974 = vmatprep.mubr.f32.mxu0 %v3775_v33  ;;  %v2123_v32 = vld [vmem:[#allocation5 + $0x110] sm:$0xff] }
 0x556   :  { %2012 = vmatpush1.msra.mxu1 %v3776_v35  ;;  %2045 = vmatprep.mubr.f32.mxu1 %v3775_v33  ;;  %v2120_v35 = vld [vmem:[#allocation5 + $0xf8] sm:$0xff] }
 0x557   :  { %2153 = vmatprep.subr.mxu0 %v2150_v10  ;;  %2224 = vmatprep.subr.mxu1 %v2152_v22  ;;  %v2091_v10 = vld [vmem:[#allocation5 + $0x10] sm:$0xff] }
 0x5f6   :  { %v1733_v36 = vpop.f32.mrf.mxu0  ;;  %v1804_v44 = vpop.f32.mrf.mxu1 }
 0x5f7   :  { %v1809_v38 = vadd.f32 %v1733_v36, %v3777_v37  ;;  %v1811_v51 = vadd.f32 %v1804_v44, %v3780_v50  ;;  %v2117_v36 = vld [vmem:[#allocation5 + $0xe0] sm:$0xff]  ;;  %v2119_v37 = vld [vmem:[#allocation5 + $0xf0] sm:$0xff]  ;;  %v2112_v44 = vld [vmem:[#allocation5 + $0xb8] sm:$0xff] }
 0x5f8   :  { %v1735_v39 = vpop.f32.mrf.mxu0  ;;  %v1806_v46 = vpop.f32.mrf.mxu1  ;;  %v2105_v50 = vld [vmem:[#allocation5 + $0x80] sm:$0xff] }
 0x5f9   :  { %v2373_v40 = vmul.f32 -1.442695, %v1809_v38  ;;  %v1810_v42 = vadd.f32 %v1735_v39, %v3778_v41  ;;  %v1812_v48 = vadd.f32 %v1806_v46, %v3779_v47  ;;  %v2114_v38 = vld [vmem:[#allocation5 + $0xc8] sm:$0xff]  ;;  %v2116_v39 = vld [vmem:[#allocation5 + $0xd8] sm:$0xff]  ;;  %v2115_v41 = vld [vmem:[#allocation5 + $0xd0] sm:$0xff] }
 0x5fa   :  { %v2111_v46 = vld [vmem:[#allocation5 + $0xb0] sm:$0xff]  ;;  %v2106_v47 = vld [vmem:[#allocation5 + $0x88] sm:$0xff] }
 0x5fb   :  { %2470 = vpow2.f32 %v2373_v40  ;;  %v2374_v45 = vmul.f32 -1.442695, %v1810_v42  ;;  %v2375_v53 = vmul.f32 -1.442695, %v1812_v48  ;;  %v2113_v40 = vld [vmem:[#allocation5 + $0xc0] sm:$0xff]  ;;  %v2110_v42 = vld [vmem:[#allocation5 + $0xa8] sm:$0xff] }
 0x5fc   :  { %v2108_v48 = vld [vmem:[#allocation5 + $0x98] sm:$0xff] }
 0x5fd   :  { %2472 = vpow2.f32 %v2374_v45  ;;  %v2109_v45 = vld [vmem:[#allocation5 + $0xa0] sm:$0xff] }
 0x5fe   :  { %2474 = vtanh.f32 %v1811_v51  ;;  %v2107_v51 = vld [vmem:[#allocation5 + $0x90] sm:$0xff] }
 0x5ff   :  { %2476 = vpow2.f32 %v2375_v53  ;;  %v2102_v53 = vld [vmem:[#allocation5 + $0x68] sm:$0xff] }
 0x608   :  { %v2471_v54 = vpop.eup %2470 }
 0x609   :  { %v1816_v55 = vadd.f32 1.0, %v2471_v54  ;;  %v2104_v54 = vld [vmem:[#allocation5 + $0x78] sm:$0xff] }
 0x60a   :  { %v2473_v56 = vpop.eup %2472 }
 0x60b   :  { %2478 = vrcp.f32 %v1816_v55  ;;  %v1822_v57 = vadd.f32 1.0, %v2473_v56  ;;  %v2475_v58 = vpop.eup %2474  ;;  %v2101_v55 = vld [vmem:[#allocation5 + $0x60] sm:$0xff]  ;;  %v2103_v56 = vld [vmem:[#allocation5 + $0x70] sm:$0xff] }
 0x60c   :  { %v2477_v59 = vpop.eup %2476 }
 0x60d   :  { %2480 = vrcp.f32 %v1822_v57  ;;  %v1829_v1 = vadd.f32 1.0, %v2477_v59  ;;  %v2098_v57 = vld [vmem:[#allocation5 + $0x48] sm:$0xff]  ;;  %v2097_v59 = vld [vmem:[#allocation5 + $0x40] sm:$0xff] }
 0x60f   :  { %2482 = vrcp.f32 %v1829_v1  ;;  %v2093_v1 = vld [vmem:[#allocation5 + $0x20] sm:$0xff] }
 0x618   :  { %v2479_v60 = vpop.eup %2478 }
 0x619   :  { %v1833_v62 = vmul.f32 %v2479_v60, %v2475_v58  ;;  %v2100_v58 = vld [vmem:[#allocation5 + $0x58] sm:$0xff]  ;;  %v2099_v60 = vld [vmem:[#allocation5 + $0x50] sm:$0xff] }
 0x61a   :  { %v2481_v63 = vpop.eup %2480 }
 0x61b   :  { %v1832_v2 = vmul.f32 %v2481_v63, %v3445_v43  ;;  %v2138_v43 = vld [vmem:[#allocation5 + $0x188] sm:$0xff]  ;;  %v2096_v63 = vld [vmem:[#allocation5 + $0x38] sm:$0xff] }
 0x61c   :  { %v2483_v5 = vpop.eup %2482 }
 0x61d   :  { %v3520_v3 = vadd.f32 %v1833_v62, %v1832_v2  ;;  %v2094_v62 = vld [vmem:[#allocation5 + $0x28] sm:$0xff]  ;;  %v2095_v2 = vld [vmem:[#allocation5 + $0x30] sm:$0xff] }
 0x61f   :  { %2484 = vtanh.f32 %v3520_v3 }
 0x62c   :  { %v2485_v8 = vpop.eup %2484 }
 0x62d   :  { %v1836_v26 = vmul.f32 %v2485_v8, %v2483_v5  ;;  %v2090_v5 = vld [vmem:[#allocation5 + $0x8] sm:$0xff]  ;;  %v2092_v8 = vld [vmem:[#allocation5 + $0x18] sm:$0xff] }
 0x62f   :  { %2376 = vst [vmem:[%s3547_s4 + $0x28] sm:$0xff] %v1836_v26  ;;  %1975 = vmatmul.mubr.f32.vlgmr.msra.gmra.mxu0 %v1836_v26  ;;  %2046 = vmatmul.mubr.f32.vlgmr.msra.gmra.mxu1 %v1836_v26  ;;  %v2089_v26 = vld [vmem:[#allocation5] sm:$0xff] }
 0x630   :  { %2217 = vmatprep.mubr.f32.mxu0 %v3775_v33  ;;  %2288 = vmatprep.mubr.f32.mxu1 %v3775_v33  ;;  %v2118_v33 = vld [vmem:[#allocation5 + $0xe8] sm:$0xff] }
 0x631   :  { %2154 = vmatpush1.msra.mxu0 %v2149_v52  ;;  %2225 = vmatpush1.msra.mxu1 %v2151_v7  ;;  %v3781_v52 = vld [vmem:[#allocation49_spill] sm:$0xff] }
 0x632   :  { %2155 = vmatprep.subr.mxu0 %v2146_v12  ;;  %2226 = vmatprep.subr.mxu1 %v2148_v11 }
 0x633   :  { %2156 = vmatpush1.msra.mxu0 %v2145_v9  ;;  %2227 = vmatpush1.msra.mxu1 %v2147_v6  ;;  %v3782_v9 = vld [vmem:[#allocation51_spill] sm:$0xff] }
 0x634   :  { %2157 = vmatprep.subr.mxu0 %v2142_v23  ;;  %2228 = vmatprep.subr.mxu1 %v2144_v21 }
 0x635   :  { %2158 = vmatpush1.msra.mxu0 %v2141_v0  ;;  %2229 = vmatpush1.msra.mxu1 %v2143_v4  ;;  %v3783_v4 = vld [vmem:[#allocation52_spill] sm:$0xff] }
 0x636   :  { %2159 = vmatprep.subr.mxu0 %v2138_v43  ;;  %2230 = vmatprep.subr.mxu1 %v2140_v16  ;;  %v3784_v16 = vld [vmem:[#allocation50_spill] sm:$0xff] }
 0x637   :  { %2160 = vmatpush1.msra.mxu0 %v2137_v34  ;;  %2231 = vmatpush1.msra.mxu1 %v2139_v49 }
 0x638   :  { %2161 = vmatprep.subr.mxu0 %v2134_v19  ;;  %2232 = vmatprep.subr.mxu1 %v2136_v18 }
 0x639   :  { %2162 = vmatpush1.msra.mxu0 %v2133_v13  ;;  %2233 = vmatpush1.msra.mxu1 %v2135_v17 }
 0x63a   :  { %2163 = vmatprep.subr.mxu0 %v2130_v15  ;;  %2234 = vmatprep.subr.mxu1 %v2132_v20 }
 0x63b   :  { %2164 = vmatpush1.msra.mxu0 %v2129_v24  ;;  %2235 = vmatpush1.msra.mxu1 %v2131_v25 }
 0x63c   :  { %2165 = vmatprep.subr.mxu0 %v2126_v14  ;;  %2236 = vmatprep.subr.mxu1 %v2128_v61 }
 0x63d   :  { %2166 = vmatpush1.msra.mxu0 %v2125_v27  ;;  %2237 = vmatpush1.msra.mxu1 %v2127_v28 }
 0x63e   :  { %2167 = vmatprep.subr.mxu0 %v2122_v29  ;;  %2238 = vmatprep.subr.mxu1 %v2124_v30 }
 0x63f   :  { %2168 = vmatpush1.msra.mxu0 %v2121_v31  ;;  %2239 = vmatpush1.msra.mxu1 %v2123_v32 }
 0x640   :  { %2169 = vmatprep.subr.mxu0 %v2118_v33  ;;  %2240 = vmatprep.subr.mxu1 %v2120_v35  ;;  %v3785_v33 = vld [vmem:[#allocation53_spill] sm:$0xff] }
 0x641   :  { %2170 = vmatpush1.msra.mxu0 %v2117_v36  ;;  %2241 = vmatpush1.msra.mxu1 %v2119_v37 }
 0x642   :  { %2171 = vmatprep.subr.mxu0 %v2114_v38  ;;  %2242 = vmatprep.subr.mxu1 %v2116_v39  ;;  %v3786_v38 = vld [vmem:[#allocation55_spill] sm:$0xff] }
 0x643   :  { %2172 = vmatpush1.msra.mxu0 %v2113_v40  ;;  %2243 = vmatpush1.msra.mxu1 %v2115_v41 }
 0x644   :  { %2173 = vmatprep.subr.mxu0 %v2110_v42  ;;  %2244 = vmatprep.subr.mxu1 %v2112_v44  ;;  %v3787_v42 = vld [vmem:[#allocation56_spill] sm:$0xff] }
 0x645   :  { %2174 = vmatpush1.msra.mxu0 %v2109_v45  ;;  %2245 = vmatpush1.msra.mxu1 %v2111_v46  ;;  %v3788_v45 = vld [vmem:[#allocation54_spill] sm:$0xff] }
 0x646   :  { %2175 = vmatprep.subr.mxu0 %v2106_v47  ;;  %2246 = vmatprep.subr.mxu1 %v2108_v48 }
 0x647   :  { %2176 = vmatpush1.msra.mxu0 %v2105_v50  ;;  %2247 = vmatpush1.msra.mxu1 %v2107_v51 }
 0x648   :  { %2177 = vmatprep.subr.mxu0 %v2102_v53  ;;  %2248 = vmatprep.subr.mxu1 %v2104_v54 }
 0x649   :  { %2178 = vmatpush1.msra.mxu0 %v2101_v55  ;;  %2249 = vmatpush1.msra.mxu1 %v2103_v56 }
 0x64a   :  { %2179 = vmatprep.subr.mxu0 %v2098_v57  ;;  %2250 = vmatprep.subr.mxu1 %v2100_v58 }
 0x64b   :  { %2180 = vmatpush1.msra.mxu0 %v2097_v59  ;;  %2251 = vmatpush1.msra.mxu1 %v2099_v60 }
 0x64c   :  { %2181 = vmatprep.subr.mxu0 %v2094_v62  ;;  %2252 = vmatprep.subr.mxu1 %v2096_v63 }
 0x64d   :  { %2182 = vmatpush1.msra.mxu0 %v2093_v1  ;;  %2253 = vmatpush1.msra.mxu1 %v2095_v2 }
 0x64e   :  { %2183 = vmatprep.subr.mxu0 %v2090_v5  ;;  %2254 = vmatprep.subr.mxu1 %v2092_v8 }
 0x64f   :  { %2184 = vmatpush1.msra.mxu0 %v2089_v26  ;;  %2255 = vmatpush1.msra.mxu1 %v2091_v10 }
 0x6ef   :  { %v1976_v22 = vpop.f32.mrf.mxu0  ;;  %v2047_v23 = vpop.f32.mrf.mxu1 }
 0x6f0   :  { %v2052_v7 = vadd.f32 %v1976_v22, %v3781_v52  ;;  %v2054_v34 = vadd.f32 %v2047_v23, %v3784_v16 }
 0x6f1   :  { %v1978_v12 = vpop.f32.mrf.mxu0  ;;  %v2049_v0 = vpop.f32.mrf.mxu1 }
 0x6f2   :  { %v2377_v11 = vmul.f32 -1.442695, %v2052_v7  ;;  %v2053_v6 = vadd.f32 %v1978_v12, %v3782_v9  ;;  %v2055_v43 = vadd.f32 %v2049_v0, %v3783_v4 }
 0x6f4   :  { %2486 = vpow2.f32 %v2377_v11  ;;  %v2378_v21 = vmul.f32 -1.442695, %v2053_v6  ;;  %v2379_v49 = vmul.f32 -1.442695, %v2055_v43 }
 0x6f6   :  { %2488 = vpow2.f32 %v2378_v21 }
 0x6f7   :  { %2490 = vtanh.f32 %v2054_v34 }
 0x6f8   :  { %2492 = vpow2.f32 %v2379_v49 }
 0x701   :  { %v2487_v19 = vpop.eup %2486 }
 0x702   :  { %v2059_v18 = vadd.f32 1.0, %v2487_v19 }
 0x703   :  { %v2489_v13 = vpop.eup %2488 }
 0x704   :  { %2494 = vrcp.f32 %v2059_v18  ;;  %v2065_v17 = vadd.f32 1.0, %v2489_v13  ;;  %v2491_v15 = vpop.eup %2490 }
 0x705   :  { %v2493_v20 = vpop.eup %2492 }
 0x706   :  { %2496 = vrcp.f32 %v2065_v17  ;;  %v2072_v61 = vadd.f32 1.0, %v2493_v20 }
 0x708   :  { %2498 = vrcp.f32 %v2072_v61 }
 0x711   :  { %v2495_v24 = vpop.eup %2494 }
 0x712   :  { %v2076_v25 = vmul.f32 %v2495_v24, %v2491_v15 }
 0x713   :  { %v2497_v14 = vpop.eup %2496 }
 0x714   :  { %v2075_v27 = vmul.f32 %v2497_v14, %v3520_v3 }
 0x715   :  { %v2499_v29 = vpop.eup %2498 }
 0x716   :  { %v2077_v28 = vadd.f32 %v2076_v25, %v2075_v27 }
 0x718   :  { %2500 = vtanh.f32 %v2077_v28 }
 0x725   :  { %v2501_v30 = vpop.eup %2500 }
 0x726   :  { %v2079_v31 = vmul.f32 %v2501_v30, %v2499_v29 }
 0x728   :  { %2380 = vst [vmem:[%s3547_s4 + $0x30] sm:$0xff] %v2079_v31  ;;  %2218 = vmatmul.mubr.f32.vlgmr.msra.gmra.mxu0 %v2079_v31  ;;  %2289 = vmatmul.mubr.f32.vlgmr.msra.gmra.mxu1 %v2079_v31 }
 0x7e8   :  { %v2219_v32 = vpop.f32.mrf.mxu0  ;;  %v2290_v3 = vpop.f32.mrf.mxu1 }
 0x7e9   :  { %v2295_v35 = vadd.f32 %v2219_v32, %v3785_v33  ;;  %v2297_v46 = vadd.f32 %v2290_v3, %v3788_v45 }
 0x7ea   :  { %v2221_v36 = vpop.f32.mrf.mxu0  ;;  %v2292_v41 = vpop.f32.mrf.mxu1 }
 0x7eb   :  { %v2381_v37 = vmul.f32 -1.442695, %v2295_v35  ;;  %v2296_v39 = vadd.f32 %v2221_v36, %v3786_v38  ;;  %v2298_v44 = vadd.f32 %v2292_v41, %v3787_v42 }
 0x7ed   :  { %2502 = vpow2.f32 %v2381_v37  ;;  %v2382_v40 = vmul.f32 -1.442695, %v2296_v39  ;;  %v2383_v47 = vmul.f32 -1.442695, %v2298_v44 }
 0x7ef   :  { %2504 = vpow2.f32 %v2382_v40 }
 0x7f0   :  { %2506 = vtanh.f32 %v2297_v46 }
 0x7f1   :  { %2508 = vpow2.f32 %v2383_v47 }
 0x7fa   :  { %v2503_v48 = vpop.eup %2502 }
 0x7fb   :  { %v2302_v50 = vadd.f32 1.0, %v2503_v48 }
 0x7fc   :  { %v2505_v51 = vpop.eup %2504 }
 0x7fd   :  { %2510 = vrcp.f32 %v2302_v50  ;;  %v2308_v53 = vadd.f32 1.0, %v2505_v51  ;;  %v2507_v54 = vpop.eup %2506 }
 0x7fe   :  { %v2509_v55 = vpop.eup %2508 }
 0x7ff   :  { %2512 = vrcp.f32 %v2308_v53  ;;  %v2315_v59 = vadd.f32 1.0, %v2509_v55 }
 0x801   :  { %2514 = vrcp.f32 %v2315_v59 }
 0x80a   :  { %v2511_v56 = vpop.eup %2510 }
 0x80b   :  { %v2319_v57 = vmul.f32 %v2511_v56, %v2507_v54 }
 0x80c   :  { %v2513_v58 = vpop.eup %2512 }
 0x80d   :  { %v2318_v60 = vmul.f32 %v2513_v58, %v2077_v28 }
 0x80e   :  { %v2515_v63 = vpop.eup %2514 }
 0x80f   :  { %v2320_v62 = vadd.f32 %v2319_v57, %v2318_v60 }
 0x811   :  { %2516 = vtanh.f32 %v2320_v62 }
 0x81e   :  { %v2517_v1 = vpop.eup %2516 }
 0x81f   :  { %v2322_v2 = vmul.f32 %v2517_v1, %v2515_v63 }
 0x821   :  { %2384 = vst [vmem:[%s3547_s4 + $0x38] sm:$0xff] %v2322_v2 }
 0x822   :  { %2329 = vsyncpa [#allocation4], 1 }
 0x823   :  { %2330 = vsyncpa [#allocation6], 1 }

</bundles_post_ra>
